<compile_context>
chip_gen: v6e
topology: v6e:2x2x1
jax: 0.10.0
libtpu: 0.0.40
codegen_flags: <defaults>
</compile_context>

<pallas_src>
import jax
import jax.numpy as jnp
from jax.experimental import pallas as pl
from jax.experimental.pallas import tpu as pltpu

LANE = 128
SUBLANE = 8


# ----------------------- Pallas kernel: fused GRU forward -----------------------

def gru_fused_kernel(x_ref,     # (T*Bp, Dp)   time-major, batch/lane padded input
                     wi_ref,    # (Dp, 3*Hp)   [W_ir|W_iz|W_in]^T, lane-aligned gate blocks
                     bi_ref,    # (1, 3*Hp)    b_ir+b_hr | b_iz+b_hz | b_in
                     wh_ref,    # (Hp, 3*Hp)   [W_hr|W_hz|W_hn]^T
                     bhn_ref,   # (1, Hp)      b_hn (kept separate: gated by r)
                     fcw_ref,   # (Hp, Op)     fc weight (padded, transposed)
                     fcb_ref,   # (1, Op)      fc bias (padded)
                     out_ref,   # (Bp, Op)     output: fc(hn)
                     gi_ref):   # scratch (T*Bp, 3*Hp)  precomputed input gates
    TB = x_ref.shape[0]
    Hp = bhn_ref.shape[1]
    Bp = out_ref.shape[0]
    T = TB // Bp

    # ---- Prologue: one big MXU GEMM for all time steps (off the serial path). ----
    gi_ref[...] = (jnp.dot(x_ref[...], wi_ref[...],
                           preferred_element_type=jnp.float32) + bi_ref[...])

    # ---- Hoist loop invariants (JAX does not CSE broadcasts; wh load off serial path). ----
    wh = wh_ref[...]                                    # (Hp, 3*Hp), loop-invariant RHS
    bhn = jnp.broadcast_to(bhn_ref[...], (Bp, Hp))

    def step(t, h):
        row = pl.multiple_of(t * Bp, SUBLANE)           # Bp is a multiple of 8
        gi_t = gi_ref[pl.ds(row, Bp), :]                # (Bp, 3*Hp), aligned dynamic slice
        # Single fused hidden matmul on the MXU: (Bp,Hp) @ (Hp,3*Hp), f32 accumulate.
        gh = jnp.dot(h, wh, preferred_element_type=jnp.float32)
        # Fused r/z sigmoid on the 2*Hp lane slab; slices stay 128-lane-aligned views.
        rz = jax.nn.sigmoid(gi_t[:, :2 * Hp] + gh[:, :2 * Hp])
        r = rz[:, :Hp]
        z = rz[:, Hp:]
        n = jnp.tanh(gi_t[:, 2 * Hp:] + r * (gh[:, 2 * Hp:] + bhn))
        return (1.0 - z) * n + z * h

    h0 = jnp.zeros((Bp, Hp), jnp.float32)
    # Modest explicit unroll even for large T (rolled loops hide the body from the LLO
    # scheduler); live state is ~1 vreg so pressure is negligible.
    hn = jax.lax.fori_loop(0, T, step, h0, unroll=min(T, 8))

    # ---- Epilogue: tiny fc, lane-dense padded output. ----
    out_ref[...] = (jnp.dot(hn, fcw_ref[...],
                            preferred_element_type=jnp.float32) + fcb_ref[...])


# ----------------------- one-time parameter preparation (hoisted out of forward) ----------

def _roundup(v, m):
    return ((v + m - 1) // m) * m


def prepare_gru_params(params):
    """Pack PyTorch-layout GRU/fc params into lane-padded, gate-concatenated kernel operands.

    Call once; reuse the result for every forward call."""
    w_ih = params["w_ih"].astype(jnp.float32)   # (3H, D)   gate order r, z, n
    w_hh = params["w_hh"].astype(jnp.float32)   # (3H, H)
    b_ih = params["b_ih"].astype(jnp.float32)   # (3H,)
    b_hh = params["b_hh"].astype(jnp.float32)   # (3H,)
    fc_w = params["fc_w"].astype(jnp.float32)   # (O, H)
    fc_b = params["fc_b"].astype(jnp.float32)   # (O,)

    H = w_hh.shape[1]
    D = w_ih.shape[1]
    O = fc_w.shape[0]
    Hp = _roundup(H, LANE)
    Dp = _roundup(D, LANE)
    Op = _roundup(O, LANE)

    # Per-gate transposed weights at lane-aligned offsets [0, Hp, 2*Hp].  Padded rows/cols
    # are zero, which keeps the padded hidden lanes exactly zero through the recurrence.
    wi = jnp.zeros((Dp, 3 * Hp), jnp.float32)
    wh = jnp.zeros((Hp, 3 * Hp), jnp.float32)
    for g in range(3):
        wi = wi.at[:D, g * Hp:g * Hp + H].set(w_ih[g * H:(g + 1) * H].T)
        wh = wh.at[:H, g * Hp:g * Hp + H].set(w_hh[g * H:(g + 1) * H].T)

    # Fold b_ih (+ b_hh for r/z) into the precomputed input gates; b_hn stays separate
    # because it is gated by r.
    bi = jnp.zeros((1, 3 * Hp), jnp.float32)
    bi = bi.at[0, 0:H].set(b_ih[0:H] + b_hh[0:H])
    bi = bi.at[0, Hp:Hp + H].set(b_ih[H:2 * H] + b_hh[H:2 * H])
    bi = bi.at[0, 2 * Hp:2 * Hp + H].set(b_ih[2 * H:3 * H])
    bhn = jnp.zeros((1, Hp), jnp.float32).at[0, :H].set(b_hh[2 * H:3 * H])

    # fc as a padded (Hp, Op) matmul: rows >= H are zero so any garbage in padded hidden
    # lanes cannot leak into the output; cols >= O are sliced off in the wrapper.
    fcw = jnp.zeros((Hp, Op), jnp.float32).at[:H, :O].set(fc_w.T)
    fcb = jnp.zeros((1, Op), jnp.float32).at[0, :O].set(fc_b)

    return {"wi": wi, "wh": wh, "bi": bi, "bhn": bhn, "fcw": fcw, "fcb": fcb,
            "in_dim": D, "hidden_dim": H, "out_dim": O}


# ----------------------- wrapper -----------------------

def gru_model_forward(x, prep):
    """x: (B, T, D) batch_first float input. prep: output of prepare_gru_params().
    Returns (B, O) fc output (== PyTorch GRUModel.forward)."""
    x = x.astype(jnp.float32)
    B, T, D = x.shape
    Dp = prep["wi"].shape[0]
    Hp = prep["wh"].shape[0]
    Op = prep["fcw"].shape[1]
    O = prep["out_dim"]
    Bp = _roundup(max(B, SUBLANE), SUBLANE)   # pad batch to a sublane multiple

    # Time-major, batch/lane padded, flattened input (T*Bp, Dp): per-step slices in the
    # kernel are then 8-sublane aligned and the prologue GEMM is fully lane-aligned.
    xt = jnp.zeros((T, Bp, Dp), jnp.float32)
    xt = xt.at[:, :B, :D].set(jnp.transpose(x, (1, 0, 2)))
    xt = xt.reshape(T * Bp, Dp)

    vmem_spec = pl.BlockSpec(memory_space=pltpu.MemorySpace.VMEM)
    out_p = pl.pallas_call(
        gru_fused_kernel,
        out_shape=jax.ShapeDtypeStruct((Bp, Op), jnp.float32),
        in_specs=[vmem_spec] * 7,
        out_specs=vmem_spec,
        scratch_shapes=[pltpu.VMEM((T * Bp, 3 * Hp), jnp.float32)],
        compiler_params=pltpu.CompilerParams(
            # Explicit scoped-VMEM limit (v5e default is only 16 MiB); actual usage here
            # is < 1 MiB, the headroom covers moderately larger T*B without T-chunking.
            vmem_limit_bytes=32 * 1024 * 1024,
        ),
    )(xt, prep["wi"], prep["bi"], prep["wh"], prep["bhn"], prep["fcw"], prep["fcb"])

    return out_p[:B, :O]   # drop batch/lane padding


# ----------------------- pure-JAX reference -----------------------

def gru_model_reference(x, params):
    x = x.astype(jnp.float32)
    B, T, D = x.shape
    H = params["w_hh"].shape[1]
    w_ih, w_hh = params["w_ih"], params["w_hh"]
    b_ih, b_hh = params["b_ih"], params["b_hh"]
    h = jnp.zeros((B, H), jnp.float32)
    for t in range(T):
        xt = x[:, t, :]
        gi = xt @ w_ih.T + b_ih
        gh = h @ w_hh.T + b_hh
        r = jax.nn.sigmoid(gi[:, 0:H] + gh[:, 0:H])
        z = jax.nn.sigmoid(gi[:, H:2 * H] + gh[:, H:2 * H])
        n = jnp.tanh(gi[:, 2 * H:] + r * gh[:, 2 * H:])
        h = (1.0 - z) * n + z * h
    return h @ params["fc_w"].T + params["fc_b"]


# ----------------------- main -----------------------

if __name__ == "__main__":
    # Small shapes consistent with GRUModel(inputDim, hiddenNum, outputDim, layerNum=1, 'GRU')
    B, T, D, H, O = 2, 8, 4, 32, 8

    key = jax.random.PRNGKey(0)
    ks = jax.random.split(key, 8)
    k = 1.0 / jnp.sqrt(H)
    params = {
        "w_ih": jax.random.uniform(ks[0], (3 * H, D), jnp.float32, -k, k),
        "w_hh": jax.random.uniform(ks[1], (3 * H, H), jnp.float32, -k, k),
        "b_ih": jax.random.uniform(ks[2], (3 * H,), jnp.float32, -k, k),
        "b_hh": jax.random.uniform(ks[3], (3 * H,), jnp.float32, -k, k),
        "fc_w": jax.random.uniform(ks[4], (O, H), jnp.float32, -k, k),
        "fc_b": jax.random.uniform(ks[5], (O,), jnp.float32, -k, k),
    }
    x = jax.random.normal(ks[6], (B, T, D), jnp.float32)

    # One-time packing, hoisted out of the forward path (perf-review item).
    prep = prepare_gru_params(params)

    out = gru_model_forward(x, prep)
    out = jax.block_until_ready(out)

    ref = gru_model_reference(x, params)
    assert out.shape == (B, O)
    assert jnp.allclose(out, ref, atol=1e-5, rtol=1e-5), (out, ref)
    print("KERNEL_OK")
</pallas_src>

<mosaic_0001>
module attributes {stable_mosaic.version = 11 : i64} {
  func.func @gru_fused_kernel(%arg0: memref<64x128xf32, #tpu.memory_space<vmem>>, %arg1: memref<128x384xf32, #tpu.memory_space<vmem>>, %arg2: memref<1x384xf32, #tpu.memory_space<vmem>>, %arg3: memref<128x384xf32, #tpu.memory_space<vmem>>, %arg4: memref<1x128xf32, #tpu.memory_space<vmem>>, %arg5: memref<128x128xf32, #tpu.memory_space<vmem>>, %arg6: memref<1x128xf32, #tpu.memory_space<vmem>>, %arg7: memref<8x128xf32, #tpu.memory_space<vmem>>, %arg8: memref<64x384xf32, #tpu.memory_space<vmem>>) attributes {dimension_semantics = [], scalar_prefetch = 0 : i64, scratch_operands = 1 : i64, tpu.core_type = #tpu.core_type<tc>} {
    %c0 = arith.constant 0 : index
    %c0_0 = arith.constant 0 : index
    %0 = vector.load %arg0[%c0, %c0_0] : memref<64x128xf32, #tpu.memory_space<vmem>>, vector<64x128xf32>
    %c0_1 = arith.constant 0 : index
    %c0_2 = arith.constant 0 : index
    %1 = vector.load %arg1[%c0_1, %c0_2] : memref<128x384xf32, #tpu.memory_space<vmem>>, vector<128x384xf32>
    %cst = arith.constant dense<0.000000e+00> : vector<64x384xf32>
    %2 = tpu.matmul %0, %1, %cst {dimension_numbers = #tpu.dot_dimension_numbers<[1], [0], [0], [1], [0, 0, 1, 1], [], []>} : vector<64x128xf32>, vector<128x384xf32>, vector<64x384xf32> -> vector<64x384xf32>
    %c0_3 = arith.constant 0 : index
    %c0_4 = arith.constant 0 : index
    %3 = vector.load %arg2[%c0_3, %c0_4] : memref<1x384xf32, #tpu.memory_space<vmem>>, vector<1x384xf32>
    %4 = vector.broadcast %3 : vector<1x384xf32> to vector<64x384xf32>
    %5 = arith.addf %2, %4 : vector<64x384xf32>
    %c0_5 = arith.constant 0 : index
    %c0_6 = arith.constant 0 : index
    %6 = vector.load %arg8[%c0_5, %c0_6] : memref<64x384xf32, #tpu.memory_space<vmem>>, vector<64x384xf32>
    tpu.vector_store %arg8[%c0_5, %c0_6], %5 {strides = array<i32>} : memref<64x384xf32, #tpu.memory_space<vmem>>, vector<64x384xf32>,
    %c0_7 = arith.constant 0 : index
    %c0_8 = arith.constant 0 : index
    %7 = vector.load %arg3[%c0_7, %c0_8] : memref<128x384xf32, #tpu.memory_space<vmem>>, vector<128x384xf32>
    %c0_9 = arith.constant 0 : index
    %c0_10 = arith.constant 0 : index
    %8 = vector.load %arg4[%c0_9, %c0_10] : memref<1x128xf32, #tpu.memory_space<vmem>>, vector<1x128xf32>
    %9 = vector.shape_cast %8 : vector<1x128xf32> to vector<1x128xf32>
    %10 = vector.broadcast %9 : vector<1x128xf32> to vector<8x128xf32>
    %cst_11 = arith.constant 0.000000e+00 : f32
    %11 = vector.broadcast %cst_11 : f32 to vector<8x128xf32>
    %c0_i32 = arith.constant 0 : i32
    %c8_i32 = arith.constant 8 : i32
    %12 = arith.muli %c0_i32, %c8_i32 : i32
    %13 = tpu.assume_multiple %12, 8 : i32
    %14 = arith.index_cast %13 : i32 to index
    %c0_12 = arith.constant 0 : index
    %15 = vector.load %arg8[%14, %c0_12] : memref<64x384xf32, #tpu.memory_space<vmem>>, vector<8x384xf32>
    %cst_13 = arith.constant dense<0.000000e+00> : vector<8x384xf32>
    %16 = tpu.matmul %11, %7, %cst_13 {dimension_numbers = #tpu.dot_dimension_numbers<[1], [0], [0], [1], [0, 0, 1, 1], [], []>} : vector<8x128xf32>, vector<128x384xf32>, vector<8x384xf32> -> vector<8x384xf32>
    %17 = vector.extract_strided_slice %15 {offsets = [0, 0], sizes = [8, 256], strides = [1, 1]} : vector<8x384xf32> to vector<8x256xf32>
    %18 = vector.extract_strided_slice %16 {offsets = [0, 0], sizes = [8, 256], strides = [1, 1]} : vector<8x384xf32> to vector<8x256xf32>
    %19 = arith.addf %17, %18 : vector<8x256xf32>
    %20 = arith.negf %19 : vector<8x256xf32>
    %21 = math.exp %20 : vector<8x256xf32>
    %cst_14 = arith.constant 1.000000e+00 : f32
    %22 = vector.broadcast %cst_14 : f32 to vector<8x256xf32>
    %23 = arith.addf %22, %21 : vector<8x256xf32>
    %24 = arith.divf %22, %23 : vector<8x256xf32>
    %25 = vector.extract_strided_slice %24 {offsets = [0, 0], sizes = [8, 128], strides = [1, 1]} : vector<8x256xf32> to vector<8x128xf32>
    %26 = vector.extract_strided_slice %24 {offsets = [0, 128], sizes = [8, 128], strides = [1, 1]} : vector<8x256xf32> to vector<8x128xf32>
    %27 = vector.extract_strided_slice %15 {offsets = [0, 256], sizes = [8, 128], strides = [1, 1]} : vector<8x384xf32> to vector<8x128xf32>
    %28 = vector.extract_strided_slice %16 {offsets = [0, 256], sizes = [8, 128], strides = [1, 1]} : vector<8x384xf32> to vector<8x128xf32>
    %29 = arith.addf %28, %10 : vector<8x128xf32>
    %30 = arith.mulf %25, %29 : vector<8x128xf32>
    %31 = arith.addf %27, %30 : vector<8x128xf32>
    %32 = math.tanh %31 : vector<8x128xf32>
    %cst_15 = arith.constant 1.000000e+00 : f32
    %33 = vector.broadcast %cst_15 : f32 to vector<8x128xf32>
    %34 = arith.subf %33, %26 : vector<8x128xf32>
    %35 = arith.mulf %34, %32 : vector<8x128xf32>
    %36 = arith.mulf %26, %11 : vector<8x128xf32>
    %37 = arith.addf %35, %36 : vector<8x128xf32>
    %c1_i32 = arith.constant 1 : i32
    %c8_i32_16 = arith.constant 8 : i32
    %38 = arith.muli %c1_i32, %c8_i32_16 : i32
    %39 = tpu.assume_multiple %38, 8 : i32
    %40 = arith.index_cast %39 : i32 to index
    %c0_17 = arith.constant 0 : index
    %41 = vector.load %arg8[%40, %c0_17] : memref<64x384xf32, #tpu.memory_space<vmem>>, vector<8x384xf32>
    %cst_18 = arith.constant dense<0.000000e+00> : vector<8x384xf32>
    %42 = tpu.matmul %37, %7, %cst_18 {dimension_numbers = #tpu.dot_dimension_numbers<[1], [0], [0], [1], [0, 0, 1, 1], [], []>} : vector<8x128xf32>, vector<128x384xf32>, vector<8x384xf32> -> vector<8x384xf32>
    %43 = vector.extract_strided_slice %41 {offsets = [0, 0], sizes = [8, 256], strides = [1, 1]} : vector<8x384xf32> to vector<8x256xf32>
    %44 = vector.extract_strided_slice %42 {offsets = [0, 0], sizes = [8, 256], strides = [1, 1]} : vector<8x384xf32> to vector<8x256xf32>
    %45 = arith.addf %43, %44 : vector<8x256xf32>
    %46 = arith.negf %45 : vector<8x256xf32>
    %47 = math.exp %46 : vector<8x256xf32>
    %cst_19 = arith.constant 1.000000e+00 : f32
    %48 = vector.broadcast %cst_19 : f32 to vector<8x256xf32>
    %49 = arith.addf %48, %47 : vector<8x256xf32>
    %50 = arith.divf %48, %49 : vector<8x256xf32>
    %51 = vector.extract_strided_slice %50 {offsets = [0, 0], sizes = [8, 128], strides = [1, 1]} : vector<8x256xf32> to vector<8x128xf32>
    %52 = vector.extract_strided_slice %50 {offsets = [0, 128], sizes = [8, 128], strides = [1, 1]} : vector<8x256xf32> to vector<8x128xf32>
    %53 = vector.extract_strided_slice %41 {offsets = [0, 256], sizes = [8, 128], strides = [1, 1]} : vector<8x384xf32> to vector<8x128xf32>
    %54 = vector.extract_strided_slice %42 {offsets = [0, 256], sizes = [8, 128], strides = [1, 1]} : vector<8x384xf32> to vector<8x128xf32>
    %55 = arith.addf %54, %10 : vector<8x128xf32>
    %56 = arith.mulf %51, %55 : vector<8x128xf32>
    %57 = arith.addf %53, %56 : vector<8x128xf32>
    %58 = math.tanh %57 : vector<8x128xf32>
    %cst_20 = arith.constant 1.000000e+00 : f32
    %59 = vector.broadcast %cst_20 : f32 to vector<8x128xf32>
    %60 = arith.subf %59, %52 : vector<8x128xf32>
    %61 = arith.mulf %60, %58 : vector<8x128xf32>
    %62 = arith.mulf %52, %37 : vector<8x128xf32>
    %63 = arith.addf %61, %62 : vector<8x128xf32>
    %c2_i32 = arith.constant 2 : i32
    %c8_i32_21 = arith.constant 8 : i32
    %64 = arith.muli %c2_i32, %c8_i32_21 : i32
    %65 = tpu.assume_multiple %64, 8 : i32
    %66 = arith.index_cast %65 : i32 to index
    %c0_22 = arith.constant 0 : index
    %67 = vector.load %arg8[%66, %c0_22] : memref<64x384xf32, #tpu.memory_space<vmem>>, vector<8x384xf32>
    %cst_23 = arith.constant dense<0.000000e+00> : vector<8x384xf32>
    %68 = tpu.matmul %63, %7, %cst_23 {dimension_numbers = #tpu.dot_dimension_numbers<[1], [0], [0], [1], [0, 0, 1, 1], [], []>} : vector<8x128xf32>, vector<128x384xf32>, vector<8x384xf32> -> vector<8x384xf32>
    %69 = vector.extract_strided_slice %67 {offsets = [0, 0], sizes = [8, 256], strides = [1, 1]} : vector<8x384xf32> to vector<8x256xf32>
    %70 = vector.extract_strided_slice %68 {offsets = [0, 0], sizes = [8, 256], strides = [1, 1]} : vector<8x384xf32> to vector<8x256xf32>
    %71 = arith.addf %69, %70 : vector<8x256xf32>
    %72 = arith.negf %71 : vector<8x256xf32>
    %73 = math.exp %72 : vector<8x256xf32>
    %cst_24 = arith.constant 1.000000e+00 : f32
    %74 = vector.broadcast %cst_24 : f32 to vector<8x256xf32>
    %75 = arith.addf %74, %73 : vector<8x256xf32>
    %76 = arith.divf %74, %75 : vector<8x256xf32>
    %77 = vector.extract_strided_slice %76 {offsets = [0, 0], sizes = [8, 128], strides = [1, 1]} : vector<8x256xf32> to vector<8x128xf32>
    %78 = vector.extract_strided_slice %76 {offsets = [0, 128], sizes = [8, 128], strides = [1, 1]} : vector<8x256xf32> to vector<8x128xf32>
    %79 = vector.extract_strided_slice %67 {offsets = [0, 256], sizes = [8, 128], strides = [1, 1]} : vector<8x384xf32> to vector<8x128xf32>
    %80 = vector.extract_strided_slice %68 {offsets = [0, 256], sizes = [8, 128], strides = [1, 1]} : vector<8x384xf32> to vector<8x128xf32>
    %81 = arith.addf %80, %10 : vector<8x128xf32>
    %82 = arith.mulf %77, %81 : vector<8x128xf32>
    %83 = arith.addf %79, %82 : vector<8x128xf32>
    %84 = math.tanh %83 : vector<8x128xf32>
    %cst_25 = arith.constant 1.000000e+00 : f32
    %85 = vector.broadcast %cst_25 : f32 to vector<8x128xf32>
    %86 = arith.subf %85, %78 : vector<8x128xf32>
    %87 = arith.mulf %86, %84 : vector<8x128xf32>
    %88 = arith.mulf %78, %63 : vector<8x128xf32>
    %89 = arith.addf %87, %88 : vector<8x128xf32>
    %c3_i32 = arith.constant 3 : i32
    %c8_i32_26 = arith.constant 8 : i32
    %90 = arith.muli %c3_i32, %c8_i32_26 : i32
    %91 = tpu.assume_multiple %90, 8 : i32
    %92 = arith.index_cast %91 : i32 to index
    %c0_27 = arith.constant 0 : index
    %93 = vector.load %arg8[%92, %c0_27] : memref<64x384xf32, #tpu.memory_space<vmem>>, vector<8x384xf32>
    %cst_28 = arith.constant dense<0.000000e+00> : vector<8x384xf32>
    %94 = tpu.matmul %89, %7, %cst_28 {dimension_numbers = #tpu.dot_dimension_numbers<[1], [0], [0], [1], [0, 0, 1, 1], [], []>} : vector<8x128xf32>, vector<128x384xf32>, vector<8x384xf32> -> vector<8x384xf32>
    %95 = vector.extract_strided_slice %93 {offsets = [0, 0], sizes = [8, 256], strides = [1, 1]} : vector<8x384xf32> to vector<8x256xf32>
    %96 = vector.extract_strided_slice %94 {offsets = [0, 0], sizes = [8, 256], strides = [1, 1]} : vector<8x384xf32> to vector<8x256xf32>
    %97 = arith.addf %95, %96 : vector<8x256xf32>
    %98 = arith.negf %97 : vector<8x256xf32>
    %99 = math.exp %98 : vector<8x256xf32>
    %cst_29 = arith.constant 1.000000e+00 : f32
    %100 = vector.broadcast %cst_29 : f32 to vector<8x256xf32>
    %101 = arith.addf %100, %99 : vector<8x256xf32>
    %102 = arith.divf %100, %101 : vector<8x256xf32>
    %103 = vector.extract_strided_slice %102 {offsets = [0, 0], sizes = [8, 128], strides = [1, 1]} : vector<8x256xf32> to vector<8x128xf32>
    %104 = vector.extract_strided_slice %102 {offsets = [0, 128], sizes = [8, 128], strides = [1, 1]} : vector<8x256xf32> to vector<8x128xf32>
    %105 = vector.extract_strided_slice %93 {offsets = [0, 256], sizes = [8, 128], strides = [1, 1]} : vector<8x384xf32> to vector<8x128xf32>
    %106 = vector.extract_strided_slice %94 {offsets = [0, 256], sizes = [8, 128], strides = [1, 1]} : vector<8x384xf32> to vector<8x128xf32>
    %107 = arith.addf %106, %10 : vector<8x128xf32>
    %108 = arith.mulf %103, %107 : vector<8x128xf32>
    %109 = arith.addf %105, %108 : vector<8x128xf32>
    %110 = math.tanh %109 : vector<8x128xf32>
    %cst_30 = arith.constant 1.000000e+00 : f32
    %111 = vector.broadcast %cst_30 : f32 to vector<8x128xf32>
    %112 = arith.subf %111, %104 : vector<8x128xf32>
    %113 = arith.mulf %112, %110 : vector<8x128xf32>
    %114 = arith.mulf %104, %89 : vector<8x128xf32>
    %115 = arith.addf %113, %114 : vector<8x128xf32>
    %c4_i32 = arith.constant 4 : i32
    %c8_i32_31 = arith.constant 8 : i32
    %116 = arith.muli %c4_i32, %c8_i32_31 : i32
    %117 = tpu.assume_multiple %116, 8 : i32
    %118 = arith.index_cast %117 : i32 to index
    %c0_32 = arith.constant 0 : index
    %119 = vector.load %arg8[%118, %c0_32] : memref<64x384xf32, #tpu.memory_space<vmem>>, vector<8x384xf32>
    %cst_33 = arith.constant dense<0.000000e+00> : vector<8x384xf32>
    %120 = tpu.matmul %115, %7, %cst_33 {dimension_numbers = #tpu.dot_dimension_numbers<[1], [0], [0], [1], [0, 0, 1, 1], [], []>} : vector<8x128xf32>, vector<128x384xf32>, vector<8x384xf32> -> vector<8x384xf32>
    %121 = vector.extract_strided_slice %119 {offsets = [0, 0], sizes = [8, 256], strides = [1, 1]} : vector<8x384xf32> to vector<8x256xf32>
    %122 = vector.extract_strided_slice %120 {offsets = [0, 0], sizes = [8, 256], strides = [1, 1]} : vector<8x384xf32> to vector<8x256xf32>
    %123 = arith.addf %121, %122 : vector<8x256xf32>
    %124 = arith.negf %123 : vector<8x256xf32>
    %125 = math.exp %124 : vector<8x256xf32>
    %cst_34 = arith.constant 1.000000e+00 : f32
    %126 = vector.broadcast %cst_34 : f32 to vector<8x256xf32>
    %127 = arith.addf %126, %125 : vector<8x256xf32>
    %128 = arith.divf %126, %127 : vector<8x256xf32>
    %129 = vector.extract_strided_slice %128 {offsets = [0, 0], sizes = [8, 128], strides = [1, 1]} : vector<8x256xf32> to vector<8x128xf32>
    %130 = vector.extract_strided_slice %128 {offsets = [0, 128], sizes = [8, 128], strides = [1, 1]} : vector<8x256xf32> to vector<8x128xf32>
    %131 = vector.extract_strided_slice %119 {offsets = [0, 256], sizes = [8, 128], strides = [1, 1]} : vector<8x384xf32> to vector<8x128xf32>
    %132 = vector.extract_strided_slice %120 {offsets = [0, 256], sizes = [8, 128], strides = [1, 1]} : vector<8x384xf32> to vector<8x128xf32>
    %133 = arith.addf %132, %10 : vector<8x128xf32>
    %134 = arith.mulf %129, %133 : vector<8x128xf32>
    %135 = arith.addf %131, %134 : vector<8x128xf32>
    %136 = math.tanh %135 : vector<8x128xf32>
    %cst_35 = arith.constant 1.000000e+00 : f32
    %137 = vector.broadcast %cst_35 : f32 to vector<8x128xf32>
    %138 = arith.subf %137, %130 : vector<8x128xf32>
    %139 = arith.mulf %138, %136 : vector<8x128xf32>
    %140 = arith.mulf %130, %115 : vector<8x128xf32>
    %141 = arith.addf %139, %140 : vector<8x128xf32>
    %c5_i32 = arith.constant 5 : i32
    %c8_i32_36 = arith.constant 8 : i32
    %142 = arith.muli %c5_i32, %c8_i32_36 : i32
    %143 = tpu.assume_multiple %142, 8 : i32
    %144 = arith.index_cast %143 : i32 to index
    %c0_37 = arith.constant 0 : index
    %145 = vector.load %arg8[%144, %c0_37] : memref<64x384xf32, #tpu.memory_space<vmem>>, vector<8x384xf32>
    %cst_38 = arith.constant dense<0.000000e+00> : vector<8x384xf32>
    %146 = tpu.matmul %141, %7, %cst_38 {dimension_numbers = #tpu.dot_dimension_numbers<[1], [0], [0], [1], [0, 0, 1, 1], [], []>} : vector<8x128xf32>, vector<128x384xf32>, vector<8x384xf32> -> vector<8x384xf32>
    %147 = vector.extract_strided_slice %145 {offsets = [0, 0], sizes = [8, 256], strides = [1, 1]} : vector<8x384xf32> to vector<8x256xf32>
    %148 = vector.extract_strided_slice %146 {offsets = [0, 0], sizes = [8, 256], strides = [1, 1]} : vector<8x384xf32> to vector<8x256xf32>
    %149 = arith.addf %147, %148 : vector<8x256xf32>
    %150 = arith.negf %149 : vector<8x256xf32>
    %151 = math.exp %150 : vector<8x256xf32>
    %cst_39 = arith.constant 1.000000e+00 : f32
    %152 = vector.broadcast %cst_39 : f32 to vector<8x256xf32>
    %153 = arith.addf %152, %151 : vector<8x256xf32>
    %154 = arith.divf %152, %153 : vector<8x256xf32>
    %155 = vector.extract_strided_slice %154 {offsets = [0, 0], sizes = [8, 128], strides = [1, 1]} : vector<8x256xf32> to vector<8x128xf32>
    %156 = vector.extract_strided_slice %154 {offsets = [0, 128], sizes = [8, 128], strides = [1, 1]} : vector<8x256xf32> to vector<8x128xf32>
    %157 = vector.extract_strided_slice %145 {offsets = [0, 256], sizes = [8, 128], strides = [1, 1]} : vector<8x384xf32> to vector<8x128xf32>
    %158 = vector.extract_strided_slice %146 {offsets = [0, 256], sizes = [8, 128], strides = [1, 1]} : vector<8x384xf32> to vector<8x128xf32>
    %159 = arith.addf %158, %10 : vector<8x128xf32>
    %160 = arith.mulf %155, %159 : vector<8x128xf32>
    %161 = arith.addf %157, %160 : vector<8x128xf32>
    %162 = math.tanh %161 : vector<8x128xf32>
    %cst_40 = arith.constant 1.000000e+00 : f32
    %163 = vector.broadcast %cst_40 : f32 to vector<8x128xf32>
    %164 = arith.subf %163, %156 : vector<8x128xf32>
    %165 = arith.mulf %164, %162 : vector<8x128xf32>
    %166 = arith.mulf %156, %141 : vector<8x128xf32>
    %167 = arith.addf %165, %166 : vector<8x128xf32>
    %c6_i32 = arith.constant 6 : i32
    %c8_i32_41 = arith.constant 8 : i32
    %168 = arith.muli %c6_i32, %c8_i32_41 : i32
    %169 = tpu.assume_multiple %168, 8 : i32
    %170 = arith.index_cast %169 : i32 to index
    %c0_42 = arith.constant 0 : index
    %171 = vector.load %arg8[%170, %c0_42] : memref<64x384xf32, #tpu.memory_space<vmem>>, vector<8x384xf32>
    %cst_43 = arith.constant dense<0.000000e+00> : vector<8x384xf32>
    %172 = tpu.matmul %167, %7, %cst_43 {dimension_numbers = #tpu.dot_dimension_numbers<[1], [0], [0], [1], [0, 0, 1, 1], [], []>} : vector<8x128xf32>, vector<128x384xf32>, vector<8x384xf32> -> vector<8x384xf32>
    %173 = vector.extract_strided_slice %171 {offsets = [0, 0], sizes = [8, 256], strides = [1, 1]} : vector<8x384xf32> to vector<8x256xf32>
    %174 = vector.extract_strided_slice %172 {offsets = [0, 0], sizes = [8, 256], strides = [1, 1]} : vector<8x384xf32> to vector<8x256xf32>
    %175 = arith.addf %173, %174 : vector<8x256xf32>
    %176 = arith.negf %175 : vector<8x256xf32>
    %177 = math.exp %176 : vector<8x256xf32>
    %cst_44 = arith.constant 1.000000e+00 : f32
    %178 = vector.broadcast %cst_44 : f32 to vector<8x256xf32>
    %179 = arith.addf %178, %177 : vector<8x256xf32>
    %180 = arith.divf %178, %179 : vector<8x256xf32>
    %181 = vector.extract_strided_slice %180 {offsets = [0, 0], sizes = [8, 128], strides = [1, 1]} : vector<8x256xf32> to vector<8x128xf32>
    %182 = vector.extract_strided_slice %180 {offsets = [0, 128], sizes = [8, 128], strides = [1, 1]} : vector<8x256xf32> to vector<8x128xf32>
    %183 = vector.extract_strided_slice %171 {offsets = [0, 256], sizes = [8, 128], strides = [1, 1]} : vector<8x384xf32> to vector<8x128xf32>
    %184 = vector.extract_strided_slice %172 {offsets = [0, 256], sizes = [8, 128], strides = [1, 1]} : vector<8x384xf32> to vector<8x128xf32>
    %185 = arith.addf %184, %10 : vector<8x128xf32>
    %186 = arith.mulf %181, %185 : vector<8x128xf32>
    %187 = arith.addf %183, %186 : vector<8x128xf32>
    %188 = math.tanh %187 : vector<8x128xf32>
    %cst_45 = arith.constant 1.000000e+00 : f32
    %189 = vector.broadcast %cst_45 : f32 to vector<8x128xf32>
    %190 = arith.subf %189, %182 : vector<8x128xf32>
    %191 = arith.mulf %190, %188 : vector<8x128xf32>
    %192 = arith.mulf %182, %167 : vector<8x128xf32>
    %193 = arith.addf %191, %192 : vector<8x128xf32>
    %c7_i32 = arith.constant 7 : i32
    %c8_i32_46 = arith.constant 8 : i32
    %194 = arith.muli %c7_i32, %c8_i32_46 : i32
    %195 = tpu.assume_multiple %194, 8 : i32
    %196 = arith.index_cast %195 : i32 to index
    %c0_47 = arith.constant 0 : index
    %197 = vector.load %arg8[%196, %c0_47] : memref<64x384xf32, #tpu.memory_space<vmem>>, vector<8x384xf32>
    %cst_48 = arith.constant dense<0.000000e+00> : vector<8x384xf32>
    %198 = tpu.matmul %193, %7, %cst_48 {dimension_numbers = #tpu.dot_dimension_numbers<[1], [0], [0], [1], [0, 0, 1, 1], [], []>} : vector<8x128xf32>, vector<128x384xf32>, vector<8x384xf32> -> vector<8x384xf32>
    %199 = vector.extract_strided_slice %197 {offsets = [0, 0], sizes = [8, 256], strides = [1, 1]} : vector<8x384xf32> to vector<8x256xf32>
    %200 = vector.extract_strided_slice %198 {offsets = [0, 0], sizes = [8, 256], strides = [1, 1]} : vector<8x384xf32> to vector<8x256xf32>
    %201 = arith.addf %199, %200 : vector<8x256xf32>
    %202 = arith.negf %201 : vector<8x256xf32>
    %203 = math.exp %202 : vector<8x256xf32>
    %cst_49 = arith.constant 1.000000e+00 : f32
    %204 = vector.broadcast %cst_49 : f32 to vector<8x256xf32>
    %205 = arith.addf %204, %203 : vector<8x256xf32>
    %206 = arith.divf %204, %205 : vector<8x256xf32>
    %207 = vector.extract_strided_slice %206 {offsets = [0, 0], sizes = [8, 128], strides = [1, 1]} : vector<8x256xf32> to vector<8x128xf32>
    %208 = vector.extract_strided_slice %206 {offsets = [0, 128], sizes = [8, 128], strides = [1, 1]} : vector<8x256xf32> to vector<8x128xf32>
    %209 = vector.extract_strided_slice %197 {offsets = [0, 256], sizes = [8, 128], strides = [1, 1]} : vector<8x384xf32> to vector<8x128xf32>
    %210 = vector.extract_strided_slice %198 {offsets = [0, 256], sizes = [8, 128], strides = [1, 1]} : vector<8x384xf32> to vector<8x128xf32>
    %211 = arith.addf %210, %10 : vector<8x128xf32>
    %212 = arith.mulf %207, %211 : vector<8x128xf32>
    %213 = arith.addf %209, %212 : vector<8x128xf32>
    %214 = math.tanh %213 : vector<8x128xf32>
    %cst_50 = arith.constant 1.000000e+00 : f32
    %215 = vector.broadcast %cst_50 : f32 to vector<8x128xf32>
    %216 = arith.subf %215, %208 : vector<8x128xf32>
    %217 = arith.mulf %216, %214 : vector<8x128xf32>
    %218 = arith.mulf %208, %193 : vector<8x128xf32>
    %219 = arith.addf %217, %218 : vector<8x128xf32>
    %c8_i32_51 = arith.constant 8 : i32
    %c0_52 = arith.constant 0 : index
    %c0_53 = arith.constant 0 : index
    %220 = vector.load %arg5[%c0_52, %c0_53] : memref<128x128xf32, #tpu.memory_space<vmem>>, vector<128x128xf32>
    %cst_54 = arith.constant dense<0.000000e+00> : vector<8x128xf32>
    %221 = tpu.matmul %219, %220, %cst_54 {dimension_numbers = #tpu.dot_dimension_numbers<[1], [0], [0], [1], [0, 0, 1, 1], [], []>} : vector<8x128xf32>, vector<128x128xf32>, vector<8x128xf32> -> vector<8x128xf32>
    %c0_55 = arith.constant 0 : index
    %c0_56 = arith.constant 0 : index
    %222 = vector.load %arg6[%c0_55, %c0_56] : memref<1x128xf32, #tpu.memory_space<vmem>>, vector<1x128xf32>
    %223 = vector.broadcast %222 : vector<1x128xf32> to vector<8x128xf32>
    %224 = arith.addf %221, %223 : vector<8x128xf32>
    %c0_57 = arith.constant 0 : index
    %c0_58 = arith.constant 0 : index
    %225 = vector.load %arg7[%c0_57, %c0_58] : memref<8x128xf32, #tpu.memory_space<vmem>>, vector<8x128xf32>
    tpu.vector_store %arg7[%c0_57, %c0_58], %224 {strides = array<i32>} : memref<8x128xf32, #tpu.memory_space<vmem>>, vector<8x128xf32>,
    return
  }
}

</mosaic_0001>

<bundles_post_ra>
// kernel: tpu_custom_call.1
= control target key start
LH: loop header
LB: loop body
LE: loop exit
PB: predicated region body
PF: predicated region fallthrough
CT: control target
= control target key end

     0   :  { %12 = vsyncpa [#allocation4], 0  ;;  %s3694_s0 = inlined_call_operand.hbm [shape: f32[64,128], index: 0, kind: input, shape index: {}]   ;;  %s3695_s1 = inlined_call_operand.hbm [shape: f32[128,384], index: 1, kind: input, shape index: {}]   ;;  %s3696_s2 = inlined_call_operand.vmem [shape: f32[1,384], index: 2, kind: input, shape index: {}]   ;;  %s3697_s3 = inlined_call_operand.hbm [shape: f32[128,384], index: 3, kind: input, shape index: {}]   ;;  %s3698_s4 = inlined_call_operand.vmem [shape: f32[1,128], index: 4, kind: input, shape index: {}]   ;;  %s3699_s5 = inlined_call_operand.hbm [shape: f32[128,128], index: 5, kind: input, shape index: {}]   ;;  %s3700_s6 = inlined_call_operand.vmem [shape: f32[1,128], index: 6, kind: input, shape index: {}]   ;;  %s3701_s7 = inlined_call_operand.hbm [shape: f32[8,128], index: 7, kind: output, shape index: {}]  }
   0x1   :  { %13 = vsyncpa [#allocation7], 0 }
   0x2   :  { %14 = vsyncpa [#allocation10], 0 }
   0x3   :  { %15 = vsyncpa [#allocation5], 0  ;;  %s2724_s24 = smov [#allocation6]  }
   0x4   :  { %s33_s25 = sshll.u32 %s2724_s24, 4  ;;  %s34_s25 = int_to_ptr.vmem [resolvable:$true] %s33_s25 }
   0x5   :  { %s2624_s26 = scalar_lea.vmem %s34_s25, 6144  ;;  %p2629_p1 = scmp.lt.s32.totalorder %s34_s25, %s34_s25 }
   0x6   :  { %p2625_p0 = scmp.ne.s32.totalorder %s34_s25, %s2624_s26  ;;  %p2630_p2 = scmp.lt.s32.totalorder %s2624_s26, %s2624_s26 }
   0x8   :  { %p2631_p3 = por %p2630_p2, %p2629_p1 }
   0xa   :  { %p2632_p4 = pnand %p2631_p3, %p2625_p0 }
   0xc   :  { %2635 = shalt.err (!%p2632_p4)
}
   0xd   :  { %s2725_s27 = smov 384   ;;  %s2726_s28 = smov 24  }
   0xe   :  { %39 = dma.hbm_to_vmem [thread:$0]  %s3695_s1, 6144, %s34_s25, [#allocation7], %s2725_s27, %s2725_s27, %s2726_s28  }
   0xf   :  { %s2727_s8 = smov [#allocation3]  }
  0x10   :  { %s21_s9 = sshll.u32 %s2727_s8, 4  ;;  %s22_s9 = int_to_ptr.vmem [resolvable:$true] %s21_s9 }
  0x11   :  { %s2644_s10 = scalar_lea.vmem %s22_s9, 1024  ;;  %p2649_p6 = scmp.lt.s32.totalorder %s22_s9, %s22_s9 }
  0x12   :  { %p2645_p5 = scmp.ne.s32.totalorder %s22_s9, %s2644_s10  ;;  %p2650_p7 = scmp.lt.s32.totalorder %s2644_s10, %s2644_s10 }
  0x14   :  { %p2651_p8 = por %p2650_p7, %p2649_p6 }
  0x16   :  { %p2652_p9 = pnand %p2651_p8, %p2645_p5 }
  0x18   :  { %2655 = shalt.err (!%p2652_p9)
}
  0x19   :  { %s2728_s11 = smov 128   ;;  %s2729_s12 = smov 8  }
  0x1a   :  { %27 = dma.hbm_to_vmem [thread:$0]  %s3694_s0, 1024, %s22_s9, [#allocation4], %s2728_s11, %s2728_s11, %s2729_s12  }
  0x1b   :  { %s2730_s15 = smov [#allocation8]   ;;  %s2731_s17 = smov [#allocation9]  }
  0x1c   :  { %s47_s16 = sshll.u32 %s2730_s15, 4  ;;  %s61_s1 = sshll.u32 %s2731_s17, 4  ;;  %s48_s16 = int_to_ptr.vmem [resolvable:$true] %s47_s16  ;;  %s62_s1 = int_to_ptr.vmem [resolvable:$true] %s61_s1 }
  0x1d   :  { %s2664_s18 = scalar_lea.vmem %s48_s16, 6144  ;;  %p2669_p11 = scmp.lt.s32.totalorder %s48_s16, %s48_s16 }
  0x1e   :  { %p2665_p10 = scmp.ne.s32.totalorder %s48_s16, %s2664_s18  ;;  %p2670_p12 = scmp.lt.s32.totalorder %s2664_s18, %s2664_s18 }
  0x20   :  { %p2671_p13 = por %p2670_p12, %p2669_p11 }
  0x22   :  { %p2672_p0 = pnand %p2671_p13, %p2665_p10 }
  0x24   :  { %2675 = shalt.err (!%p2672_p0)
}
  0x25   :  { %53 = dma.hbm_to_vmem [thread:$0]  %s3697_s3, 6144, %s48_s16, [#allocation7], %s2725_s27, %s2725_s27, %s2726_s28  }
  0x26   :  { %s2684_s0 = scalar_lea.vmem %s62_s1, 2048  ;;  %p2689_p2 = scmp.lt.s32.totalorder %s62_s1, %s62_s1 }
  0x27   :  { %p2685_p1 = scmp.ne.s32.totalorder %s62_s1, %s2684_s0  ;;  %p2690_p3 = scmp.lt.s32.totalorder %s2684_s0, %s2684_s0 }
  0x29   :  { %p2691_p4 = por %p2690_p3, %p2689_p2 }
  0x2b   :  { %p2692_p5 = pnand %p2691_p4, %p2685_p1 }
  0x2d   :  { %2695 = shalt.err (!%p2692_p5)
}
  0x2e   :  { %67 = dma.hbm_to_vmem [thread:$0]  %s3699_s5, 2048, %s62_s1, [#allocation10], %s2728_s11, %s2728_s11, %s2729_s12  }
  0x2f   :  { %2716 = dma.done.wait [#allocation4], 1024  }
  0x30   :  { %2717 = vsyncadd [#allocation4], 4294966272 }
  0x31   :  { %2718 = dma.done.wait [#allocation7], 12288  }
  0x32   :  { %2719 = vsyncadd [#allocation7], 4294955008 }
  0x33   :  { %2720 = dma.done.wait [#allocation10], 2048  }
  0x34   :  { %2721 = vsyncadd [#allocation10], 4294965248  ;;  %v3702_v0 = vmov 0.0   ;;  %v136_v1 = vld [vmem:[#allocation6 + $0x170] sm:$0xff]  ;;  %v135_v2 = vld [vmem:[#allocation6 + $0x168] sm:$0xff]  ;;  %vm2733_vm0 = vmmov 0  }
  0x35   :  { %219 = vmatprep.mubr.f32.mxu0 %v3702_v0  ;;  %v133_v3 = vld [vmem:[#allocation6 + $0x158] sm:$0xff]  ;;  %155 = vmatprep.subr.mxu0 %v136_v1  ;;  %v132_v4 = vld [vmem:[#allocation6 + $0x150] sm:$0xff]  ;;  %v130_v5 = vld [vmem:[#allocation6 + $0x140] sm:$0xff]  ;;  %s2734_s27 = smov [#allocation11]  }
  0x36   :  { %156 = vmatpush1.msra.mxu0 %v135_v2  ;;  %v129_v6 = vld [vmem:[#allocation6 + $0x138] sm:$0xff]  ;;  %v127_v7 = vld [vmem:[#allocation6 + $0x128] sm:$0xff]  ;;  %v126_v8 = vld [vmem:[#allocation6 + $0x120] sm:$0xff]  ;;  %s1904_s28 = sshll.u32 %s2734_s27, 4  ;;  %s1905_s28 = int_to_ptr.vmem [resolvable:$true] %s1904_s28 }
  0x37   :  { %157 = vmatprep.subr.mxu0 %v133_v3  ;;  %v124_v9 = vld [vmem:[#allocation6 + $0x110] sm:$0xff]  ;;  %v123_v10 = vld [vmem:[#allocation6 + $0x108] sm:$0xff]  ;;  %v121_v11 = vld [vmem:[#allocation6 + $0xf8] sm:$0xff]  ;;  %s2696_s29 = scalar_lea.vmem %s1905_s28, 128  ;;  %p2701_p7 = scmp.lt.s32.totalorder %s1905_s28, %s1905_s28 }
  0x38   :  { %158 = vmatpush1.msra.mxu0 %v132_v4  ;;  %v120_v12 = vld [vmem:[#allocation6 + $0xf0] sm:$0xff]  ;;  %v118_v13 = vld [vmem:[#allocation6 + $0xe0] sm:$0xff]  ;;  %v137_v14 = vld [vmem:[#allocation6 + $0x178] sm:$0xff]  ;;  %p2697_p6 = scmp.ne.s32.totalorder %s1905_s28, %s2696_s29  ;;  %p2702_p8 = scmp.lt.s32.totalorder %s2696_s29, %s2696_s29 }
  0x39   :  { %159 = vmatprep.subr.mxu0 %v130_v5  ;;  %v117_v15 = vld [vmem:[#allocation6 + $0xd8] sm:$0xff]  ;;  %2117 = vmatprep.subr.mxu1 %v137_v14  ;;  %v134_v16 = vld [vmem:[#allocation6 + $0x160] sm:$0xff]  ;;  %v115_v17 = vld [vmem:[#allocation6 + $0xc8] sm:$0xff] }
  0x3a   :  { %160 = vmatpush1.msra.mxu0 %v129_v6  ;;  %2118 = vmatpush3.msra.mxu1 %v137_v14  ;;  %v131_v18 = vld [vmem:[#allocation6 + $0x148] sm:$0xff]  ;;  %v114_v19 = vld [vmem:[#allocation6 + $0xc0] sm:$0xff]  ;;  %v112_v20 = vld [vmem:[#allocation6 + $0xb0] sm:$0xff]  ;;  %p2703_p9 = por %p2702_p8, %p2701_p7 }
  0x3b   :  { %161 = vmatprep.subr.mxu0 %v127_v7  ;;  %2119 = vmatprep.subr.mxu1 %v134_v16  ;;  %v128_v21 = vld [vmem:[#allocation6 + $0x130] sm:$0xff]  ;;  %v111_v22 = vld [vmem:[#allocation6 + $0xa8] sm:$0xff]  ;;  %v109_v23 = vld [vmem:[#allocation6 + $0x98] sm:$0xff] }
  0x3c   :  { %162 = vmatpush1.msra.mxu0 %v126_v8  ;;  %2120 = vmatpush3.msra.mxu1 %v134_v16  ;;  %v125_v24 = vld [vmem:[#allocation6 + $0x118] sm:$0xff]  ;;  %v108_v25 = vld [vmem:[#allocation6 + $0x90] sm:$0xff]  ;;  %v106_v26 = vld [vmem:[#allocation6 + $0x80] sm:$0xff]  ;;  %p2704_p10 = pnand %p2703_p9, %p2697_p6 }
  0x3d   :  { %163 = vmatprep.subr.mxu0 %v124_v9  ;;  %2121 = vmatprep.subr.mxu1 %v131_v18  ;;  %v122_v27 = vld [vmem:[#allocation6 + $0x100] sm:$0xff]  ;;  %v105_v28 = vld [vmem:[#allocation6 + $0x78] sm:$0xff]  ;;  %v103_v29 = vld [vmem:[#allocation6 + $0x68] sm:$0xff] }
  0x3e   :  { %164 = vmatpush1.msra.mxu0 %v123_v10  ;;  %2122 = vmatpush3.msra.mxu1 %v131_v18  ;;  %v119_v30 = vld [vmem:[#allocation6 + $0xe8] sm:$0xff]  ;;  %v102_v31 = vld [vmem:[#allocation6 + $0x60] sm:$0xff]  ;;  %v100_v32 = vld [vmem:[#allocation6 + $0x50] sm:$0xff] }
  0x3f   :  { %165 = vmatprep.subr.mxu0 %v121_v11  ;;  %2123 = vmatprep.subr.mxu1 %v128_v21  ;;  %v116_v33 = vld [vmem:[#allocation6 + $0xd0] sm:$0xff]  ;;  %v99_v34 = vld [vmem:[#allocation6 + $0x48] sm:$0xff]  ;;  %v97_v35 = vld [vmem:[#allocation6 + $0x38] sm:$0xff] }
  0x40   :  { %166 = vmatpush1.msra.mxu0 %v120_v12  ;;  %2124 = vmatpush3.msra.mxu1 %v128_v21  ;;  %v113_v36 = vld [vmem:[#allocation6 + $0xb8] sm:$0xff]  ;;  %v96_v37 = vld [vmem:[#allocation6 + $0x30] sm:$0xff]  ;;  %v94_v38 = vld [vmem:[#allocation6 + $0x20] sm:$0xff] }
  0x41   :  { %167 = vmatprep.subr.mxu0 %v118_v13  ;;  %2125 = vmatprep.subr.mxu1 %v125_v24  ;;  %v110_v39 = vld [vmem:[#allocation6 + $0xa0] sm:$0xff]  ;;  %v93_v40 = vld [vmem:[#allocation6 + $0x18] sm:$0xff]  ;;  %v91_v41 = vld [vmem:[#allocation6 + $0x8] sm:$0xff] }
  0x42   :  { %168 = vmatpush1.msra.mxu0 %v117_v15  ;;  %2126 = vmatpush3.msra.mxu1 %v125_v24  ;;  %v107_v42 = vld [vmem:[#allocation6 + $0x88] sm:$0xff]  ;;  %v90_v43 = vld [vmem:[#allocation6] sm:$0xff]  ;;  %v2796_v45 = vld [vmem:[#allocation8 + $0x170] sm:$0xff] }
  0x43   :  { %169 = vmatprep.subr.mxu0 %v115_v17  ;;  %2127 = vmatprep.subr.mxu1 %v122_v27  ;;  %v2794_v44 = vld [vmem:[#allocation3] sm:$0xff]  ;;  %3720 = vst [vmem:[#allocation16_spill] sm:$0xff] %v2796_v45  ;;  %v2798_v46 = vld [vmem:[#allocation8 + $0x168] sm:$0xff]  ;;  %v2800_v47 = vld [vmem:[#allocation8 + $0x158] sm:$0xff] }
  0x44   :  { %170 = vmatpush1.msra.mxu0 %v114_v19  ;;  %2128 = vmatpush3.msra.mxu1 %v122_v27  ;;  %v104_v48 = vld [vmem:[#allocation6 + $0x70] sm:$0xff]  ;;  %v2808_v50 = vld [vmem:[#allocation3 + $0x8] sm:$0xff]  ;;  %v2810_v51 = vld [vmem:[#allocation8 + $0x140] sm:$0xff] }
  0x45   :  { %171 = vmatprep.subr.mxu0 %v112_v20  ;;  %2129 = vmatprep.subr.mxu1 %v119_v30  ;;  %v2804_v49 = vld [vmem:[#allocation8 + $0x150] sm:$0xff]  ;;  %v2813_v52 = vld [vmem:[#allocation8 + $0x138] sm:$0xff]  ;;  %v2816_v53 = vld [vmem:[#allocation8 + $0x128] sm:$0xff] }
  0x46   :  { %172 = vmatpush1.msra.mxu0 %v111_v22  ;;  %2130 = vmatpush3.msra.mxu1 %v119_v30  ;;  %v101_v54 = vld [vmem:[#allocation6 + $0x58] sm:$0xff]  ;;  %v2820_v55 = vld [vmem:[#allocation8 + $0x120] sm:$0xff]  ;;  %v2824_v56 = vld [vmem:[#allocation3 + $0x10] sm:$0xff] }
  0x47   :  { %173 = vmatprep.subr.mxu0 %v109_v23  ;;  %2131 = vmatprep.subr.mxu1 %v116_v33  ;;  %v2826_v57 = vld [vmem:[#allocation8 + $0x110] sm:$0xff]  ;;  %v2829_v58 = vld [vmem:[#allocation8 + $0x108] sm:$0xff]  ;;  %v2832_v59 = vld [vmem:[#allocation8 + $0xf8] sm:$0xff] }
  0x48   :  { %174 = vmatpush1.msra.mxu0 %v108_v25  ;;  %2132 = vmatpush3.msra.mxu1 %v116_v33  ;;  %v98_v60 = vld [vmem:[#allocation6 + $0x40] sm:$0xff]  ;;  %v2836_v61 = vld [vmem:[#allocation8 + $0xf0] sm:$0xff]  ;;  %v2840_v62 = vld [vmem:[#allocation3 + $0x18] sm:$0xff] }
  0x49   :  { %175 = vmatprep.subr.mxu0 %v106_v26  ;;  %2133 = vmatprep.subr.mxu1 %v113_v36  ;;  %v2842_v63 = vld [vmem:[#allocation8 + $0xe0] sm:$0xff]  ;;  %v2845_v1 = vld [vmem:[#allocation8 + $0xd8] sm:$0xff]  ;;  %v2848_v2 = vld [vmem:[#allocation8 + $0xc8] sm:$0xff] }
  0x4a   :  { %176 = vmatpush1.msra.mxu0 %v105_v28  ;;  %2134 = vmatpush3.msra.mxu1 %v113_v36  ;;  %v95_v3 = vld [vmem:[#allocation6 + $0x28] sm:$0xff]  ;;  %v2852_v4 = vld [vmem:[#allocation8 + $0xc0] sm:$0xff]  ;;  %v2858_v6 = vld [vmem:[#allocation8 + $0xb0] sm:$0xff] }
  0x4b   :  { %177 = vmatprep.subr.mxu0 %v103_v29  ;;  %2135 = vmatprep.subr.mxu1 %v110_v39  ;;  %v2856_v5 = vld [vmem:[#allocation3 + $0x20] sm:$0xff]  ;;  %v2861_v7 = vld [vmem:[#allocation8 + $0xa8] sm:$0xff]  ;;  %v2864_v8 = vld [vmem:[#allocation8 + $0x98] sm:$0xff] }
  0x4c   :  { %178 = vmatpush1.msra.mxu0 %v102_v31  ;;  %2136 = vmatpush3.msra.mxu1 %v110_v39  ;;  %v92_v9 = vld [vmem:[#allocation6 + $0x10] sm:$0xff]  ;;  %v87_v11 = vld [vmem:[#allocation3 + $0x28] sm:$0xff]  ;;  %v2872_v12 = vld [vmem:[#allocation8 + $0x80] sm:$0xff] }
  0x4d   :  { %179 = vmatprep.subr.mxu0 %v100_v32  ;;  %2137 = vmatprep.subr.mxu1 %v107_v42  ;;  %v2868_v10 = vld [vmem:[#allocation8 + $0x90] sm:$0xff]  ;;  %v2875_v13 = vld [vmem:[#allocation8 + $0x78] sm:$0xff]  ;;  %v2878_v14 = vld [vmem:[#allocation8 + $0x68] sm:$0xff] }
  0x4e   :  { %180 = vmatpush1.msra.mxu0 %v99_v34  ;;  %2138 = vmatpush3.msra.mxu1 %v107_v42  ;;  %v2881_v15 = vld [vmem:[#allocation8 + $0x60] sm:$0xff]  ;;  %v88_v16 = vld [vmem:[#allocation3 + $0x30] sm:$0xff]  ;;  %v2888_v18 = vld [vmem:[#allocation8 + $0x48] sm:$0xff]  ;;  %v140_v42 = vlaneseq }
  0x4f   :  { %181 = vmatprep.subr.mxu0 %v97_v35  ;;  %2139 = vmatprep.subr.mxu1 %v104_v48  ;;  %v2885_v17 = vld [vmem:[#allocation8 + $0x50] sm:$0xff]  ;;  %v2892_v19 = vld [vmem:[#allocation8 + $0x38] sm:$0xff]  ;;  %v2902_v23 = vld [vmem:[#allocation8 + $0x20] sm:$0xff] }
  0x50   :  { %182 = vmatpush1.msra.mxu0 %v96_v37  ;;  %2140 = vmatpush3.msra.mxu1 %v104_v48  ;;  %v2896_v20 = vld [vmem:[#allocation8 + $0x30] sm:$0xff]  ;;  %v2898_v21 = vld [vmem:[#allocation8 + $0x178] sm:$0xff]  ;;  %v2909_v25 = vld [vmem:[#allocation8 + $0x8] sm:$0xff] }
  0x51   :  { %183 = vmatprep.subr.mxu0 %v94_v38  ;;  %2141 = vmatprep.subr.mxu1 %v101_v54  ;;  %v89_v22 = vld [vmem:[#allocation3 + $0x38] sm:$0xff]  ;;  %3722 = vst [vmem:[#allocation18_spill] sm:$0xff] %v2909_v25  ;;  %v2913_v26 = vld [vmem:[#allocation8] sm:$0xff]  ;;  %v2921_v28 = vld [vmem:[#allocation8 + $0x148] sm:$0xff] }
  0x52   :  { %184 = vmatpush1.msra.mxu0 %v93_v40  ;;  %2142 = vmatpush3.msra.mxu1 %v101_v54  ;;  %v2905_v24 = vld [vmem:[#allocation8 + $0x18] sm:$0xff]  ;;  %3723 = vst [vmem:[#allocation19_spill] sm:$0xff] %v2913_v26  ;;  %v2915_v27 = vld [vmem:[#allocation8 + $0x160] sm:$0xff]  ;;  %v2927_v29 = vld [vmem:[#allocation8 + $0x130] sm:$0xff] }
  0x53   :  { %185 = vmatprep.subr.mxu0 %v91_v41  ;;  %2143 = vmatprep.subr.mxu1 %v98_v60  ;;  %3721 = vst [vmem:[#allocation17_spill] sm:$0xff] %v2905_v24  ;;  %v2932_v30 = vld [vmem:[#allocation8 + $0x118] sm:$0xff]  ;;  %v2938_v31 = vld [vmem:[#allocation8 + $0x100] sm:$0xff]  ;;  %v2944_v32 = vld [vmem:[#allocation8 + $0xe8] sm:$0xff] }
  0x54   :  { %186 = vmatpush1.msra.mxu0 %v90_v43  ;;  %2144 = vmatpush3.msra.mxu1 %v98_v60  ;;  %v2948_v33 = vld [vmem:[#allocation8 + $0xd0] sm:$0xff]  ;;  %v2954_v34 = vld [vmem:[#allocation8 + $0xb8] sm:$0xff]  ;;  %v2960_v35 = vld [vmem:[#allocation8 + $0xa0] sm:$0xff]  ;;  %v141_v43 = vshrl.u32 %v140_v42, 7 }
  0x55   :  { %220 = vmatmul.mubr.f32.vlgmr.msra.gmra.mxu0 %v2794_v44  ;;  %458 = vmatprep.subr.mxu0 %v2796_v45  ;;  %v2966_v36 = vld [vmem:[#allocation8 + $0x88] sm:$0xff]  ;;  %v2972_v37 = vld [vmem:[#allocation8 + $0x70] sm:$0xff]  ;;  %v2978_v38 = vld [vmem:[#allocation8 + $0x58] sm:$0xff] }
  0x56   :  { %459 = vmatpush1.msra.mxu0 %v2798_v46  ;;  %225 = vmatprep.mubr.f32.mxu0 %v3702_v0  ;;  %v2984_v39 = vld [vmem:[#allocation8 + $0x40] sm:$0xff]  ;;  %v2990_v40 = vld [vmem:[#allocation8 + $0x28] sm:$0xff]  ;;  %v2996_v41 = vld [vmem:[#allocation8 + $0x10] sm:$0xff]  ;;  %v146_v54 = vsub.s32 1, %v141_v43 }
  0x57   :  { %460 = vmatprep.subr.mxu0 %v2800_v47  ;;  %2145 = vmatprep.subr.mxu1 %v95_v3  ;;  %3724 = vst [vmem:[#allocation20_spill] sm:$0xff] %v2990_v40  ;;  %3725 = vst [vmem:[#allocation21_spill] sm:$0xff] %v2996_v41  ;;  %v138_v48 = vld [vmem:[%s3696_s2] sm:$0x7] }
  0x58   :  { %461 = vmatpush1.msra.mxu0 %v2804_v49  ;;  %2146 = vmatpush3.msra.mxu1 %v95_v3  ;;  %v147_v3 = vrot.slane %v138_v48, %v146_v54 }
  0x59   :  { %226 = vmatmul.mubr.f32.gmra.mxu0 %v2808_v50  ;;  %462 = vmatprep.subr.mxu0 %v2810_v51 }
  0x5a   :  { %463 = vmatpush1.msra.mxu0 %v2813_v52  ;;  %231 = vmatprep.mubr.f32.mxu0 %v3702_v0 }
  0x5b   :  { %464 = vmatprep.subr.mxu0 %v2816_v53  ;;  %2147 = vmatprep.subr.mxu1 %v92_v9 }
  0x5c   :  { %465 = vmatpush1.msra.mxu0 %v2820_v55  ;;  %2148 = vmatpush3.msra.mxu1 %v92_v9 }
  0x5d   :  { %232 = vmatmul.mubr.f32.gmra.mxu0 %v2824_v56  ;;  %466 = vmatprep.subr.mxu0 %v2826_v57 }
  0x5e   :  { %467 = vmatpush1.msra.mxu0 %v2829_v58  ;;  %237 = vmatprep.mubr.f32.mxu0 %v3702_v0 }
  0x5f   :  { %468 = vmatprep.subr.mxu0 %v2832_v59  ;;  %2149 = vmatprep.mubr.f32.mxu1 %v2794_v44  ;;  %v142_v44 = vsub.s32 0, %v141_v43 }
  0x60   :  { %469 = vmatpush1.msra.mxu0 %v2836_v61  ;;  %2161 = vmatprep.subr.mxu1 %v3702_v0 }
  0x61   :  { %238 = vmatmul.mubr.f32.gmra.mxu0 %v2840_v62  ;;  %470 = vmatprep.subr.mxu0 %v2842_v63  ;;  %v143_v60 = vrot.slane %v138_v48, %v142_v44 }
  0x62   :  { %471 = vmatpush1.msra.mxu0 %v2845_v1  ;;  %243 = vmatprep.mubr.f32.mxu0 %v3702_v0 }
  0x63   :  { %472 = vmatprep.subr.mxu0 %v2848_v2  ;;  %2150 = vmatmul.mubr.f32.vlgmr.msra.gmra.mxu1 %v2808_v50 }
  0x64   :  { %473 = vmatpush1.msra.mxu0 %v2852_v4  ;;  %2162 = vmatpush3.msra.mxu1 %v2898_v21 }
  0x65   :  { %244 = vmatmul.mubr.f32.gmra.mxu0 %v2856_v5  ;;  %474 = vmatprep.subr.mxu0 %v2858_v6 }
  0x66   :  { %475 = vmatpush1.msra.mxu0 %v2861_v7  ;;  %249 = vmatprep.mubr.f32.mxu0 %v3702_v0 }
  0x67   :  { %476 = vmatprep.subr.mxu0 %v2864_v8  ;;  %2163 = vmatprep.subr.mxu1 %v3702_v0 }
  0x68   :  { %477 = vmatpush1.msra.mxu0 %v2868_v10  ;;  %2164 = vmatpush3.msra.mxu1 %v2915_v27 }
  0x69   :  { %250 = vmatmul.mubr.f32.gmra.mxu0 %v87_v11  ;;  %478 = vmatprep.subr.mxu0 %v2872_v12 }
  0x6a   :  { %479 = vmatpush1.msra.mxu0 %v2875_v13  ;;  %255 = vmatprep.mubr.f32.mxu0 %v3702_v0 }
  0x6b   :  { %480 = vmatprep.subr.mxu0 %v2878_v14  ;;  %2165 = vmatprep.subr.mxu1 %v3702_v0 }
  0x6c   :  { %481 = vmatpush1.msra.mxu0 %v2881_v15  ;;  %2166 = vmatpush3.msra.mxu1 %v2921_v28 }
  0x6d   :  { %256 = vmatmul.mubr.f32.gmra.mxu0 %v88_v16  ;;  %482 = vmatprep.subr.mxu0 %v2885_v17 }
  0x6e   :  { %483 = vmatpush1.msra.mxu0 %v2888_v18  ;;  %261 = vmatprep.mubr.f32.mxu0 %v3702_v0 }
  0x6f   :  { %484 = vmatprep.subr.mxu0 %v2892_v19  ;;  %2152 = vmatprep.mubr.f32.mxu1 %v2824_v56 }
  0x70   :  { %485 = vmatpush1.msra.mxu0 %v2896_v20  ;;  %2167 = vmatprep.subr.mxu1 %v3702_v0 }
  0x71   :  { %262 = vmatmul.mubr.f32.gmra.mxu0 %v89_v22  ;;  %486 = vmatprep.subr.mxu0 %v2902_v23 }
  0x72   :  { %487 = vmatpush1.msra.mxu0 %v2905_v24  ;;  %522 = vmatprep.mubr.f32.mxu0 %v3702_v0 }
  0x73   :  { %488 = vmatprep.subr.mxu0 %v2909_v25  ;;  %2153 = vmatmul.mubr.f32.gmra.mxu1 %v2840_v62 }
  0x74   :  { %489 = vmatpush1.msra.mxu0 %v2913_v26  ;;  %2168 = vmatpush3.msra.mxu1 %v2927_v29 }
  0x75   :  { %523 = vmatmul.mubr.f32.vlgmr.msra.gmra.mxu0 %v3702_v0  ;;  %2155 = vmatprep.mubr.f32.mxu1 %v2856_v5 }
  0x76   :  { %2169 = vmatprep.subr.mxu1 %v3702_v0  ;;  %627 = vmatprep.subr.mxu0 %v2796_v45 }
  0x77   :  { %2170 = vmatpush3.msra.mxu1 %v2932_v30  ;;  %628 = vmatpush1.msra.mxu0 %v2798_v46 }
  0x78   :  { %2171 = vmatprep.subr.mxu1 %v3702_v0  ;;  %2156 = vmatmul.mubr.f32.gmra.mxu1 %v87_v11 }
  0x79   :  { %2172 = vmatpush3.msra.mxu1 %v2938_v31  ;;  %2158 = vmatprep.mubr.f32.mxu1 %v88_v16 }
  0x7a   :  { %2173 = vmatprep.subr.mxu1 %v3702_v0  ;;  %629 = vmatprep.subr.mxu0 %v2800_v47 }
  0x7b   :  { %2174 = vmatpush3.msra.mxu1 %v2944_v32  ;;  %630 = vmatpush1.msra.mxu0 %v2804_v49 }
  0x7c   :  { %2175 = vmatprep.subr.mxu1 %v3702_v0  ;;  %2159 = vmatmul.mubr.f32.gmra.mxu1 %v89_v22 }
  0x7d   :  { %2176 = vmatpush3.msra.mxu1 %v2948_v33  ;;  %2193 = vmatprep.mubr.msk.f32.mxu1 %vm2733_vm0, %v3702_v0 }
  0x7e   :  { %2177 = vmatprep.subr.mxu1 %v3702_v0  ;;  %631 = vmatprep.subr.mxu0 %v2810_v51 }
  0x7f   :  { %2178 = vmatpush3.msra.mxu1 %v2954_v34  ;;  %632 = vmatpush1.msra.mxu0 %v2813_v52 }
  0x80   :  { %2179 = vmatprep.subr.mxu1 %v3702_v0  ;;  %633 = vmatprep.subr.mxu0 %v2816_v53 }
  0x81   :  { %2180 = vmatpush3.msra.mxu1 %v2960_v35  ;;  %634 = vmatpush1.msra.mxu0 %v2820_v55 }
  0x82   :  { %2181 = vmatprep.subr.mxu1 %v3702_v0  ;;  %635 = vmatprep.subr.mxu0 %v2826_v57 }
  0x83   :  { %2182 = vmatpush3.msra.mxu1 %v2966_v36  ;;  %636 = vmatpush1.msra.mxu0 %v2829_v58 }
  0x84   :  { %2183 = vmatprep.subr.mxu1 %v3702_v0  ;;  %637 = vmatprep.subr.mxu0 %v2832_v59 }
  0x85   :  { %2184 = vmatpush3.msra.mxu1 %v2972_v37  ;;  %638 = vmatpush1.msra.mxu0 %v2836_v61 }
  0x86   :  { %2185 = vmatprep.subr.mxu1 %v3702_v0  ;;  %639 = vmatprep.subr.mxu0 %v2842_v63 }
  0x87   :  { %2186 = vmatpush3.msra.mxu1 %v2978_v38  ;;  %640 = vmatpush1.msra.mxu0 %v2845_v1 }
  0x88   :  { %2187 = vmatprep.subr.mxu1 %v3702_v0  ;;  %641 = vmatprep.subr.mxu0 %v2848_v2 }
  0x89   :  { %2188 = vmatpush3.msra.mxu1 %v2984_v39  ;;  %642 = vmatpush1.msra.mxu0 %v2852_v4 }
  0x8a   :  { %2189 = vmatprep.subr.mxu1 %v3702_v0  ;;  %643 = vmatprep.subr.mxu0 %v2858_v6 }
  0x8b   :  { %2190 = vmatpush3.msra.mxu1 %v2990_v40  ;;  %644 = vmatpush1.msra.mxu0 %v2861_v7 }
  0x8c   :  { %2191 = vmatprep.subr.mxu1 %v3702_v0  ;;  %645 = vmatprep.subr.mxu0 %v2864_v8 }
  0x8d   :  { %2192 = vmatpush3.msra.mxu1 %v2996_v41  ;;  %646 = vmatpush1.msra.mxu0 %v2868_v10 }
  0x8e   :  { %2194 = vmatmul.mubr.f32.vlgmr.msra.gmra.mxu1 %v3702_v0  ;;  %2196 = vmatprep.subr.mxu1 %v3702_v0 }
  0x8f   :  { %2197 = vmatpush3.msra.mxu1 %v2898_v21  ;;  %647 = vmatprep.subr.mxu0 %v2872_v12 }
  0x90   :  { %2198 = vmatprep.subr.mxu1 %v3702_v0  ;;  %648 = vmatpush1.msra.mxu0 %v2875_v13 }
  0x91   :  { %2199 = vmatpush3.msra.mxu1 %v2915_v27  ;;  %649 = vmatprep.subr.mxu0 %v2878_v14 }
  0x92   :  { %2200 = vmatprep.subr.mxu1 %v3702_v0  ;;  %650 = vmatpush1.msra.mxu0 %v2881_v15 }
  0x93   :  { %2201 = vmatpush3.msra.mxu1 %v2921_v28  ;;  %651 = vmatprep.subr.mxu0 %v2885_v17 }
  0x94   :  { %2202 = vmatprep.subr.mxu1 %v3702_v0  ;;  %652 = vmatpush1.msra.mxu0 %v2888_v18 }
  0x95   :  { %2203 = vmatpush3.msra.mxu1 %v2927_v29  ;;  %653 = vmatprep.subr.mxu0 %v2892_v19 }
  0x96   :  { %2204 = vmatprep.subr.mxu1 %v3702_v0  ;;  %654 = vmatpush1.msra.mxu0 %v2896_v20 }
  0x97   :  { %2205 = vmatpush3.msra.mxu1 %v2932_v30  ;;  %655 = vmatprep.subr.mxu0 %v2902_v23 }
  0x98   :  { %2206 = vmatprep.subr.mxu1 %v3702_v0  ;;  %656 = vmatpush1.msra.mxu0 %v2905_v24 }
  0x99   :  { %2207 = vmatpush3.msra.mxu1 %v2938_v31  ;;  %657 = vmatprep.subr.mxu0 %v2909_v25 }
  0x9a   :  { %2208 = vmatprep.subr.mxu1 %v3702_v0  ;;  %658 = vmatpush1.msra.mxu0 %v2913_v26 }
  0x9b   :  { %2209 = vmatpush3.msra.mxu1 %v2944_v32  ;;  %691 = vmatprep.mubr.f32.mxu0 %v3702_v0 }
  0x9c   :  { %2210 = vmatprep.subr.mxu1 %v3702_v0  ;;  %2228 = vmatprep.mubr.msk.f32.mxu1 %vm2733_vm0, %v3702_v0 }
  0x9d   :  { %2211 = vmatpush3.msra.mxu1 %v2948_v33  ;;  %796 = vmatprep.subr.mxu0 %v2796_v45 }
  0x9e   :  { %2212 = vmatprep.subr.mxu1 %v3702_v0 }
  0x9f   :  { %2213 = vmatpush3.msra.mxu1 %v2954_v34 }
  0xa0   :  { %2214 = vmatprep.subr.mxu1 %v3702_v0 }
  0xa1   :  { %2215 = vmatpush3.msra.mxu1 %v2960_v35 }
  0xa2   :  { %2216 = vmatprep.subr.mxu1 %v3702_v0 }
  0xa3   :  { %2217 = vmatpush3.msra.mxu1 %v2966_v36 }
  0xa4   :  { %2218 = vmatprep.subr.mxu1 %v3702_v0 }
  0xa5   :  { %2219 = vmatpush3.msra.mxu1 %v2972_v37 }
  0xa6   :  { %2220 = vmatprep.subr.mxu1 %v3702_v0 }
  0xa7   :  { %2221 = vmatpush3.msra.mxu1 %v2978_v38 }
  0xa8   :  { %2222 = vmatprep.subr.mxu1 %v3702_v0 }
  0xa9   :  { %2223 = vmatpush3.msra.mxu1 %v2984_v39 }
  0xaa   :  { %2224 = vmatprep.subr.mxu1 %v3702_v0 }
  0xab   :  { %2225 = vmatpush3.msra.mxu1 %v2990_v40 }
  0xac   :  { %2226 = vmatprep.subr.mxu1 %v3702_v0 }
  0xad   :  { %2227 = vmatpush3.msra.mxu1 %v2996_v41 }
  0xae   :  { %2231 = vmatprep.subr.mxu1 %v3702_v0 }
 0x115   :  { %v221_v50 = vpop.f32.mrf.mxu0 }
 0x117   :  { %v223_v56 = vpop.f32.mrf.mxu0 }
 0x119   :  { %v227_v62 = vpop.f32.mrf.mxu0 }
 0x11a   :  { %v3058_v5 = vadd.f32 %v227_v62, %v143_v60 }
 0x11b   :  { %v229_v9 = vpop.f32.mrf.mxu0 }
 0x11c   :  { %3726 = vst [vmem:[#allocation22_spill] sm:$0xff] %v3058_v5  ;;  %v3060_v11 = vadd.f32 %v229_v9, %v147_v3  ;;  %v150_v9 = vsub.s32 2, %v141_v43 }
 0x11d   :  { %v233_v16 = vpop.f32.mrf.mxu0 }
 0x11e   :  { %3727 = vst [vmem:[#allocation23_spill] sm:$0xff] %v3060_v11  ;;  %v3062_v22 = vadd.f32 %v233_v16, %v143_v60 }
 0x11f   :  { %v235_v42 = vpop.f32.mrf.mxu0 }
 0x120   :  { %3728 = vst [vmem:[#allocation24_spill] sm:$0xff] %v3062_v22  ;;  %v3064_v0 = vadd.f32 %v235_v42, %v147_v3  ;;  %v151_v42 = vrot.slane %v138_v48, %v150_v9 }
 0x121   :  { %v239_v45 = vpop.f32.mrf.mxu0 }
 0x122   :  { %3729 = vst [vmem:[#allocation25_spill] sm:$0xff] %v3064_v0  ;;  %v3066_v41 = vadd.f32 %v239_v45, %v143_v60 }
 0x123   :  { %v241_v26 = vpop.f32.mrf.mxu0 }
 0x124   :  { %3730 = vst [vmem:[#allocation26_spill] sm:$0xff] %v3066_v41  ;;  %v3068_v25 = vadd.f32 %v241_v26, %v147_v3  ;;  %v2151_v26 = vpop.f32.mrf.mxu1 }
 0x125   :  { %v245_v44 = vpop.f32.mrf.mxu0 }
 0x126   :  { %3731 = vst [vmem:[#allocation27_spill] sm:$0xff] %v3068_v25  ;;  %v3070_v40 = vadd.f32 %v245_v44, %v143_v60  ;;  %v3082_v44 = vadd.f32 %v2151_v26, %v151_v42 }
 0x127   :  { %v247_v54 = vpop.f32.mrf.mxu0 }
 0x128   :  { %3732 = vst [vmem:[#allocation28_spill] sm:$0xff] %v3070_v40  ;;  %v3072_v62 = vadd.f32 %v247_v54, %v147_v3 }
 0x129   :  { %v251_v11 = vpop.f32.mrf.mxu0 }
 0x12a   :  { %3733 = vst [vmem:[#allocation29_spill] sm:$0xff] %v3072_v62  ;;  %v3074_v5 = vadd.f32 %v251_v11, %v143_v60  ;;  %v222_v62 = vadd.f32 %v221_v50, %v143_v60 }
 0x12b   :  { %v253_v16 = vpop.f32.mrf.mxu0 }
 0x12c   :  { %3734 = vst [vmem:[#allocation30_spill] sm:$0xff] %v3074_v5  ;;  %v3076_v22 = vadd.f32 %v253_v16, %v147_v3  ;;  %v334_v16 = vpop.f32.mrf.mxu1 }
 0x12d   :  { %v257_v0 = vpop.f32.mrf.mxu0 }
 0x12e   :  { %3735 = vst [vmem:[#allocation31_spill] sm:$0xff] %v3076_v22  ;;  %v3078_v45 = vadd.f32 %v257_v0, %v143_v60 }
 0x12f   :  { %v259_v41 = vpop.f32.mrf.mxu0 }
 0x130   :  { %3736 = vst [vmem:[#allocation32_spill] sm:$0xff] %v3078_v45  ;;  %v3080_v25 = vadd.f32 %v259_v41, %v147_v3  ;;  %v224_v41 = vadd.f32 %v223_v56, %v147_v3 }
 0x131   :  { %v263_v40 = vpop.f32.mrf.mxu0 }
 0x132   :  { %3737 = vst [vmem:[#allocation33_spill] sm:$0xff] %v3080_v25  ;;  %v3084_v54 = vadd.f32 %v263_v40, %v143_v60 }
 0x133   :  { %v265_v43 = vpop.f32.mrf.mxu0  ;;  %v2154_v48 = vpop.f32.mrf.mxu1 }
 0x134   :  { %3738 = vst [vmem:[#allocation34_spill] sm:$0xff] %v3084_v54  ;;  %v3086_v11 = vadd.f32 %v265_v43, %v147_v3  ;;  %v3088_v0 = vadd.f32 %v2154_v48, %v151_v42 }
 0x135   :  { %v524_v5 = vpop.f32.mrf.mxu0  ;;  %v344_v24 = vpop.f32.mrf.mxu1 }
 0x136   :  { %3739 = vst [vmem:[#allocation35_spill] sm:$0xff] %v3086_v11  ;;  %v599_v22 = vadd.f32 %v524_v5, %v222_v62  ;;  %3740 = vst [vmem:[#allocation36_spill] sm:$0xff] %v3088_v0  ;;  %v3090_v26 = vadd.f32 %v344_v24, %v151_v42 }
 0x137   :  { %v526_v45 = vpop.f32.mrf.mxu0 }
 0x138   :  { %v1923_v9 = vmul.f32 -1.442695, %v599_v22  ;;  %3741 = vst [vmem:[#allocation37_spill] sm:$0xff] %v3090_v26  ;;  %v2157_v25 = vpop.f32.mrf.mxu1  ;;  %v600_v40 = vadd.f32 %v526_v45, %v224_v41 }
 0x139   :  { %v3092_v54 = vadd.f32 %v2157_v25, %v151_v42  ;;  %v3103_v25 = vld [vmem:[%s3698_s4] ss:$0 sm:$0xff] }
 0x13a   :  { %2487 = vpow2.f32 %v1923_v9  ;;  %v354_v50 = vpop.f32.mrf.mxu1  ;;  %v1924_v11 = vmul.f32 -1.442695, %v600_v40 }
 0x13b   :  { %3742 = vst [vmem:[#allocation38_spill] sm:$0xff] %v3092_v54  ;;  %v3094_v60 = vadd.f32 %v354_v50, %v151_v42  ;;  %v335_v50 = vadd.f32 %v334_v16, %v151_v42  ;;  %v3747_v16 = vld [vmem:[#allocation17_spill] sm:$0xff] }
 0x13c   :  { %v2160_v43 = vpop.f32.mrf.mxu1  ;;  %2489 = vpow2.f32 %v1924_v11 }
 0x13d   :  { %3743 = vst [vmem:[#allocation39_spill] sm:$0xff] %v3094_v60  ;;  %v3096_v5 = vadd.f32 %v2160_v43, %v151_v42 }
 0x13e   :  { %v364_v22 = vpop.f32.mrf.mxu1 }
 0x13f   :  { %3744 = vst [vmem:[#allocation40_spill] sm:$0xff] %v3096_v5  ;;  %v3098_v62 = vadd.f32 %v364_v22, %v151_v42  ;;  %v3746_v42 = vmov 0.0  }
 0x141   :  { %3745 = vst [vmem:[#allocation41_spill] sm:$0xff] %v3098_v62 }
 0x147   :  { %v2488_v48 = vpop.eup %2487 }
 0x148   :  { %v607_v56 = vadd.f32 1.0, %v2488_v48 }
 0x149   :  { %v2490_v24 = vpop.eup %2489 }
 0x14a   :  { %2491 = vrcp.f32 %v607_v56  ;;  %v608_v9 = vadd.f32 1.0, %v2490_v24  ;;  %v3750_v24 = vld [vmem:[#allocation19_spill] sm:$0xff] }
 0x14c   :  { %2493 = vrcp.f32 %v608_v9 }
 0x14e   :  { %v595_v3 = vpop.f32.mrf.mxu1 }
 0x14f   :  { %v613_v41 = vadd.f32 %v3103_v25, %v595_v3  ;;  %v3751_v3 = vld [vmem:[#allocation21_spill] sm:$0xff] }
 0x150   :  { %v2195_v45 = vpop.f32.mrf.mxu1 }
 0x151   :  { %v3752_v45 = vld [vmem:[#allocation16_spill] sm:$0xff] }
 0x157   :  { %v2492_v40 = vpop.eup %2491 }
 0x158   :  { %v614_v43 = vmul.f32 %v2492_v40, %v613_v41  ;;  %v3753_v40 = vld [vmem:[#allocation22_spill] sm:$0xff] }
 0x159   :  { %v2494_v11 = vpop.eup %2493 }
 0x15a   :  { %v615_v22 = vadd.f32 %v614_v43, %v335_v50  ;;  %v617_v48 = vsub.f32 1.0, %v2494_v11  ;;  %v619_v62 = vmul.f32 0.0, %v2494_v11 }
 0x15c   :  { %2495 = vtanh.f32 %v615_v22 }
 0x169   :  { %v2496_v56 = vpop.eup %2495 }
 0x16a   :  { %v618_v5 = vmul.f32 %v2496_v56, %v617_v48  ;;  %v3754_v48 = vld [vmem:[#allocation23_spill] sm:$0xff] }
 0x16c   :  { %v3106_v54 = vadd.f32 %v619_v62, %v618_v5  ;;  %v3748_v5 = vld [vmem:[#allocation20_spill] sm:$0xff]  ;;  %v3749_v62 = vld [vmem:[#allocation18_spill] sm:$0xff] }
 0x16e   :  { %692 = vmatmul.mubr.f32.vlgmr.msra.gmra.mxu0 %v3106_v54  ;;  %2229 = vmatmul.mubr.f32.vlgmr.msra.gmra.mxu1 %v3106_v54 }
 0x16f   :  { %797 = vmatpush1.msra.mxu0 %v2798_v46  ;;  %2232 = vmatpush3.msra.mxu1 %v2898_v21 }
 0x170   :  { %798 = vmatprep.subr.mxu0 %v2800_v47  ;;  %2233 = vmatprep.subr.mxu1 %v3746_v42 }
 0x171   :  { %799 = vmatpush1.msra.mxu0 %v2804_v49  ;;  %2234 = vmatpush3.msra.mxu1 %v2915_v27 }
 0x172   :  { %800 = vmatprep.subr.mxu0 %v2810_v51  ;;  %2235 = vmatprep.subr.mxu1 %v3746_v42 }
 0x173   :  { %801 = vmatpush1.msra.mxu0 %v2813_v52  ;;  %2236 = vmatpush3.msra.mxu1 %v2921_v28 }
 0x174   :  { %802 = vmatprep.subr.mxu0 %v2816_v53  ;;  %2237 = vmatprep.subr.mxu1 %v3746_v42 }
 0x175   :  { %803 = vmatpush1.msra.mxu0 %v2820_v55  ;;  %2238 = vmatpush3.msra.mxu1 %v2927_v29 }
 0x176   :  { %804 = vmatprep.subr.mxu0 %v2826_v57  ;;  %2239 = vmatprep.subr.mxu1 %v3746_v42 }
 0x177   :  { %805 = vmatpush1.msra.mxu0 %v2829_v58  ;;  %2240 = vmatpush3.msra.mxu1 %v2932_v30 }
 0x178   :  { %806 = vmatprep.subr.mxu0 %v2832_v59  ;;  %2241 = vmatprep.subr.mxu1 %v3746_v42 }
 0x179   :  { %807 = vmatpush1.msra.mxu0 %v2836_v61  ;;  %2242 = vmatpush3.msra.mxu1 %v2938_v31 }
 0x17a   :  { %808 = vmatprep.subr.mxu0 %v2842_v63  ;;  %2243 = vmatprep.subr.mxu1 %v3746_v42 }
 0x17b   :  { %809 = vmatpush1.msra.mxu0 %v2845_v1  ;;  %2244 = vmatpush3.msra.mxu1 %v2944_v32 }
 0x17c   :  { %810 = vmatprep.subr.mxu0 %v2848_v2  ;;  %2245 = vmatprep.subr.mxu1 %v3746_v42 }
 0x17d   :  { %811 = vmatpush1.msra.mxu0 %v2852_v4  ;;  %2246 = vmatpush3.msra.mxu1 %v2948_v33 }
 0x17e   :  { %812 = vmatprep.subr.mxu0 %v2858_v6  ;;  %2247 = vmatprep.subr.mxu1 %v3746_v42 }
 0x17f   :  { %813 = vmatpush1.msra.mxu0 %v2861_v7  ;;  %2248 = vmatpush3.msra.mxu1 %v2954_v34 }
 0x180   :  { %814 = vmatprep.subr.mxu0 %v2864_v8  ;;  %2249 = vmatprep.subr.mxu1 %v3746_v42 }
 0x181   :  { %815 = vmatpush1.msra.mxu0 %v2868_v10  ;;  %2250 = vmatpush3.msra.mxu1 %v2960_v35 }
 0x182   :  { %816 = vmatprep.subr.mxu0 %v2872_v12  ;;  %2251 = vmatprep.subr.mxu1 %v3746_v42 }
 0x183   :  { %817 = vmatpush1.msra.mxu0 %v2875_v13  ;;  %2252 = vmatpush3.msra.mxu1 %v2966_v36 }
 0x184   :  { %818 = vmatprep.subr.mxu0 %v2878_v14  ;;  %2253 = vmatprep.subr.mxu1 %v3746_v42 }
 0x185   :  { %819 = vmatpush1.msra.mxu0 %v2881_v15  ;;  %2254 = vmatpush3.msra.mxu1 %v2972_v37 }
 0x186   :  { %820 = vmatprep.subr.mxu0 %v2885_v17  ;;  %2255 = vmatprep.subr.mxu1 %v3746_v42 }
 0x187   :  { %821 = vmatpush1.msra.mxu0 %v2888_v18  ;;  %2256 = vmatpush3.msra.mxu1 %v2978_v38 }
 0x188   :  { %822 = vmatprep.subr.mxu0 %v2892_v19  ;;  %2257 = vmatprep.subr.mxu1 %v3746_v42 }
 0x189   :  { %823 = vmatpush1.msra.mxu0 %v2896_v20  ;;  %2258 = vmatpush3.msra.mxu1 %v2984_v39 }
 0x18a   :  { %824 = vmatprep.subr.mxu0 %v2902_v23  ;;  %2259 = vmatprep.subr.mxu1 %v3746_v42 }
 0x18b   :  { %825 = vmatpush1.msra.mxu0 %v3747_v16  ;;  %2260 = vmatpush3.msra.mxu1 %v3748_v5 }
 0x18c   :  { %826 = vmatprep.subr.mxu0 %v3749_v62  ;;  %2261 = vmatprep.subr.mxu1 %v3746_v42 }
 0x18d   :  { %827 = vmatpush1.msra.mxu0 %v3750_v24  ;;  %860 = vmatprep.mubr.f32.mxu0 %v3746_v42 }
 0x18e   :  { %2262 = vmatpush3.msra.mxu1 %v3751_v3  ;;  %2263 = vmatprep.mubr.msk.f32.mxu1 %vm2733_vm0, %v3746_v42 }
 0x18f   :  { %965 = vmatprep.subr.mxu0 %v3752_v45  ;;  %2266 = vmatprep.subr.mxu1 %v3746_v42 }
 0x22e   :  { %v693_v9 = vpop.f32.mrf.mxu0  ;;  %v764_v41 = vpop.f32.mrf.mxu1 }
 0x22f   :  { %v768_v50 = vadd.f32 %v693_v9, %v3753_v40  ;;  %v782_v45 = vadd.f32 %v3103_v25, %v764_v41 }
 0x230   :  { %v2230_v43 = vpop.f32.mrf.mxu1  ;;  %v695_v11 = vpop.f32.mrf.mxu0 }
 0x231   :  { %v1925_v22 = vmul.f32 -1.442695, %v768_v50  ;;  %v769_v56 = vadd.f32 %v695_v11, %v3754_v48 }
 0x233   :  { %2497 = vpow2.f32 %v1925_v22  ;;  %v1926_v60 = vmul.f32 -1.442695, %v769_v56 }
 0x235   :  { %2499 = vpow2.f32 %v1926_v60 }
 0x240   :  { %v2498_v0 = vpop.eup %2497 }
 0x241   :  { %v776_v26 = vadd.f32 1.0, %v2498_v0  ;;  %v3757_v0 = vld [vmem:[#allocation19_spill] sm:$0xff] }
 0x242   :  { %v2500_v3 = vpop.eup %2499 }
 0x243   :  { %2501 = vrcp.f32 %v776_v26  ;;  %v777_v24 = vadd.f32 1.0, %v2500_v3  ;;  %v3758_v26 = vld [vmem:[#allocation21_spill] sm:$0xff]  ;;  %v3760_v3 = vld [vmem:[#allocation24_spill] sm:$0xff] }
 0x245   :  { %2503 = vrcp.f32 %v777_v24 }
 0x250   :  { %v2502_v62 = vpop.eup %2501 }
 0x251   :  { %v783_v5 = vmul.f32 %v2502_v62, %v782_v45 }
 0x252   :  { %v2504_v40 = vpop.eup %2503 }
 0x253   :  { %v784_v9 = vadd.f32 %v783_v5, %v3082_v44  ;;  %v786_v50 = vsub.f32 1.0, %v2504_v40  ;;  %v788_v11 = vmul.f32 %v2504_v40, %v3106_v54  ;;  %v3755_v44 = vld [vmem:[#allocation20_spill] sm:$0xff]  ;;  %v3756_v54 = vld [vmem:[#allocation18_spill] sm:$0xff] }
 0x254   :  { %v3759_v5 = vld [vmem:[#allocation16_spill] sm:$0xff] }
 0x255   :  { %2505 = vtanh.f32 %v784_v9  ;;  %v3761_v9 = vld [vmem:[#allocation25_spill] sm:$0xff] }
 0x262   :  { %v2506_v43 = vpop.eup %2505 }
 0x263   :  { %v787_v22 = vmul.f32 %v2506_v43, %v786_v50 }
 0x265   :  { %v3182_v60 = vadd.f32 %v788_v11, %v787_v22 }
 0x267   :  { %861 = vmatmul.mubr.f32.vlgmr.msra.gmra.mxu0 %v3182_v60  ;;  %2264 = vmatmul.mubr.f32.vlgmr.msra.gmra.mxu1 %v3182_v60 }
 0x268   :  { %966 = vmatpush1.msra.mxu0 %v2798_v46  ;;  %2267 = vmatpush3.msra.mxu1 %v2898_v21 }
 0x269   :  { %967 = vmatprep.subr.mxu0 %v2800_v47  ;;  %2268 = vmatprep.subr.mxu1 %v3746_v42 }
 0x26a   :  { %968 = vmatpush1.msra.mxu0 %v2804_v49  ;;  %2269 = vmatpush3.msra.mxu1 %v2915_v27 }
 0x26b   :  { %969 = vmatprep.subr.mxu0 %v2810_v51  ;;  %2270 = vmatprep.subr.mxu1 %v3746_v42 }
 0x26c   :  { %970 = vmatpush1.msra.mxu0 %v2813_v52  ;;  %2271 = vmatpush3.msra.mxu1 %v2921_v28 }
 0x26d   :  { %971 = vmatprep.subr.mxu0 %v2816_v53  ;;  %2272 = vmatprep.subr.mxu1 %v3746_v42 }
 0x26e   :  { %972 = vmatpush1.msra.mxu0 %v2820_v55  ;;  %2273 = vmatpush3.msra.mxu1 %v2927_v29 }
 0x26f   :  { %973 = vmatprep.subr.mxu0 %v2826_v57  ;;  %2274 = vmatprep.subr.mxu1 %v3746_v42 }
 0x270   :  { %974 = vmatpush1.msra.mxu0 %v2829_v58  ;;  %2275 = vmatpush3.msra.mxu1 %v2932_v30 }
 0x271   :  { %975 = vmatprep.subr.mxu0 %v2832_v59  ;;  %2276 = vmatprep.subr.mxu1 %v3746_v42 }
 0x272   :  { %976 = vmatpush1.msra.mxu0 %v2836_v61  ;;  %2277 = vmatpush3.msra.mxu1 %v2938_v31 }
 0x273   :  { %977 = vmatprep.subr.mxu0 %v2842_v63  ;;  %2278 = vmatprep.subr.mxu1 %v3746_v42 }
 0x274   :  { %978 = vmatpush1.msra.mxu0 %v2845_v1  ;;  %2279 = vmatpush3.msra.mxu1 %v2944_v32 }
 0x275   :  { %979 = vmatprep.subr.mxu0 %v2848_v2  ;;  %2280 = vmatprep.subr.mxu1 %v3746_v42 }
 0x276   :  { %980 = vmatpush1.msra.mxu0 %v2852_v4  ;;  %2281 = vmatpush3.msra.mxu1 %v2948_v33 }
 0x277   :  { %981 = vmatprep.subr.mxu0 %v2858_v6  ;;  %2282 = vmatprep.subr.mxu1 %v3746_v42 }
 0x278   :  { %982 = vmatpush1.msra.mxu0 %v2861_v7  ;;  %2283 = vmatpush3.msra.mxu1 %v2954_v34 }
 0x279   :  { %983 = vmatprep.subr.mxu0 %v2864_v8  ;;  %2284 = vmatprep.subr.mxu1 %v3746_v42 }
 0x27a   :  { %984 = vmatpush1.msra.mxu0 %v2868_v10  ;;  %2285 = vmatpush3.msra.mxu1 %v2960_v35 }
 0x27b   :  { %985 = vmatprep.subr.mxu0 %v2872_v12  ;;  %2286 = vmatprep.subr.mxu1 %v3746_v42 }
 0x27c   :  { %986 = vmatpush1.msra.mxu0 %v2875_v13  ;;  %2287 = vmatpush3.msra.mxu1 %v2966_v36 }
 0x27d   :  { %987 = vmatprep.subr.mxu0 %v2878_v14  ;;  %2288 = vmatprep.subr.mxu1 %v3746_v42 }
 0x27e   :  { %988 = vmatpush1.msra.mxu0 %v2881_v15  ;;  %2289 = vmatpush3.msra.mxu1 %v2972_v37 }
 0x27f   :  { %989 = vmatprep.subr.mxu0 %v2885_v17  ;;  %2290 = vmatprep.subr.mxu1 %v3746_v42 }
 0x280   :  { %990 = vmatpush1.msra.mxu0 %v2888_v18  ;;  %2291 = vmatpush3.msra.mxu1 %v2978_v38 }
 0x281   :  { %991 = vmatprep.subr.mxu0 %v2892_v19  ;;  %2292 = vmatprep.subr.mxu1 %v3746_v42 }
 0x282   :  { %992 = vmatpush1.msra.mxu0 %v2896_v20  ;;  %2293 = vmatpush3.msra.mxu1 %v2984_v39 }
 0x283   :  { %993 = vmatprep.subr.mxu0 %v2902_v23  ;;  %2294 = vmatprep.subr.mxu1 %v3746_v42 }
 0x284   :  { %994 = vmatpush1.msra.mxu0 %v3747_v16  ;;  %2295 = vmatpush3.msra.mxu1 %v3755_v44  ;;  %v3762_v44 = vld [vmem:[#allocation37_spill] sm:$0xff] }
 0x285   :  { %995 = vmatprep.subr.mxu0 %v3756_v54  ;;  %2296 = vmatprep.subr.mxu1 %v3746_v42 }
 0x286   :  { %996 = vmatpush1.msra.mxu0 %v3757_v0  ;;  %1029 = vmatprep.mubr.f32.mxu0 %v3746_v42 }
 0x287   :  { %2297 = vmatpush3.msra.mxu1 %v3758_v26  ;;  %2298 = vmatprep.mubr.msk.f32.mxu1 %vm2733_vm0, %v3746_v42 }
 0x288   :  { %1134 = vmatprep.subr.mxu0 %v3759_v5  ;;  %2301 = vmatprep.subr.mxu1 %v3746_v42 }
 0x327   :  { %v862_v62 = vpop.f32.mrf.mxu0  ;;  %v933_v24 = vpop.f32.mrf.mxu1 }
 0x328   :  { %v937_v45 = vadd.f32 %v862_v62, %v3760_v3  ;;  %v951_v5 = vadd.f32 %v3103_v25, %v933_v24  ;;  %v3358_v24 = vld [vmem:[#allocation8 + $0x138] sm:$0xff] }
 0x329   :  { %v2265_v41 = vpop.f32.mrf.mxu1  ;;  %v864_v56 = vpop.f32.mrf.mxu0 }
 0x32a   :  { %v1927_v48 = vmul.f32 -1.442695, %v937_v45  ;;  %v938_v40 = vadd.f32 %v864_v56, %v3761_v9 }
 0x32c   :  { %2507 = vpow2.f32 %v1927_v48  ;;  %v1928_v50 = vmul.f32 -1.442695, %v938_v40  ;;  %v3362_v40 = vld [vmem:[#allocation8 + $0x128] sm:$0xff] }
 0x32e   :  { %2509 = vpow2.f32 %v1928_v50  ;;  %v3366_v50 = vld [vmem:[#allocation8 + $0x120] sm:$0xff] }
 0x339   :  { %v2508_v43 = vpop.eup %2507 }
 0x33a   :  { %v945_v22 = vadd.f32 1.0, %v2508_v43  ;;  %v3374_v43 = vld [vmem:[#allocation8 + $0x108] sm:$0xff] }
 0x33b   :  { %v2510_v11 = vpop.eup %2509 }
 0x33c   :  { %2511 = vrcp.f32 %v945_v22  ;;  %v946_v26 = vadd.f32 1.0, %v2510_v11  ;;  %v3382_v22 = vld [vmem:[#allocation8 + $0xf0] sm:$0xff]  ;;  %v3390_v11 = vld [vmem:[#allocation8 + $0xd8] sm:$0xff] }
 0x33e   :  { %2513 = vrcp.f32 %v946_v26  ;;  %v3354_v26 = vld [vmem:[#allocation8 + $0x140] sm:$0xff] }
 0x349   :  { %v2512_v0 = vpop.eup %2511 }
 0x34a   :  { %v952_v54 = vmul.f32 %v2512_v0, %v951_v5  ;;  %v3350_v0 = vld [vmem:[#allocation8 + $0x150] sm:$0xff]  ;;  %v3398_v5 = vld [vmem:[#allocation8 + $0xc0] sm:$0xff] }
 0x34b   :  { %v2514_v3 = vpop.eup %2513 }
 0x34c   :  { %v953_v62 = vadd.f32 %v952_v54, %v3762_v44  ;;  %v955_v45 = vsub.f32 1.0, %v2514_v3  ;;  %v957_v56 = vmul.f32 %v2514_v3, %v3182_v60  ;;  %v3340_v60 = vld [vmem:[#allocation8 + $0x168] sm:$0xff]  ;;  %v3343_v44 = vld [vmem:[#allocation8 + $0x178] sm:$0xff]  ;;  %v3414_v3 = vld [vmem:[#allocation8 + $0x90] sm:$0xff] }
 0x34d   :  { %v3346_v54 = vld [vmem:[#allocation8 + $0x158] sm:$0xff] }
 0x34e   :  { %2515 = vtanh.f32 %v953_v62  ;;  %v3406_v62 = vld [vmem:[#allocation8 + $0xa8] sm:$0xff] }
 0x35b   :  { %v2516_v41 = vpop.eup %2515 }
 0x35c   :  { %v956_v48 = vmul.f32 %v2516_v41, %v955_v45  ;;  %v3422_v45 = vld [vmem:[#allocation8 + $0x78] sm:$0xff]  ;;  %v3430_v41 = vld [vmem:[#allocation8 + $0x60] sm:$0xff] }
 0x35e   :  { %v3258_v9 = vadd.f32 %v957_v56, %v956_v48  ;;  %v3438_v48 = vld [vmem:[#allocation8 + $0x48] sm:$0xff]  ;;  %v3446_v56 = vld [vmem:[#allocation8 + $0x30] sm:$0xff] }
 0x360   :  { %1030 = vmatmul.mubr.f32.vlgmr.msra.gmra.mxu0 %v3258_v9  ;;  %2299 = vmatmul.mubr.f32.vlgmr.msra.gmra.mxu1 %v3258_v9 }
 0x361   :  { %1135 = vmatpush1.msra.mxu0 %v2798_v46  ;;  %2302 = vmatpush3.msra.mxu1 %v2898_v21  ;;  %v3763_v46 = vld [vmem:[#allocation20_spill] sm:$0xff] }
 0x362   :  { %1136 = vmatprep.subr.mxu0 %v2800_v47  ;;  %2303 = vmatprep.subr.mxu1 %v3746_v42  ;;  %v3764_v47 = vld [vmem:[#allocation18_spill] sm:$0xff] }
 0x363   :  { %1137 = vmatpush1.msra.mxu0 %v2804_v49  ;;  %2304 = vmatpush3.msra.mxu1 %v2915_v27  ;;  %v3765_v49 = vld [vmem:[#allocation19_spill] sm:$0xff] }
 0x364   :  { %1138 = vmatprep.subr.mxu0 %v2810_v51  ;;  %2305 = vmatprep.subr.mxu1 %v3746_v42  ;;  %v3766_v51 = vld [vmem:[#allocation21_spill] sm:$0xff] }
 0x365   :  { %1139 = vmatpush1.msra.mxu0 %v2813_v52  ;;  %2306 = vmatpush3.msra.mxu1 %v2921_v28  ;;  %v3327_v52 = vld [vmem:[#allocation8 + $0x170] sm:$0xff] }
 0x366   :  { %1140 = vmatprep.subr.mxu0 %v2816_v53  ;;  %2307 = vmatprep.subr.mxu1 %v3746_v42 }
 0x367   :  { %1141 = vmatpush1.msra.mxu0 %v2820_v55  ;;  %2308 = vmatpush3.msra.mxu1 %v2927_v29 }
 0x368   :  { %1142 = vmatprep.subr.mxu0 %v2826_v57  ;;  %2309 = vmatprep.subr.mxu1 %v3746_v42  ;;  %v3767_v57 = vld [vmem:[#allocation26_spill] sm:$0xff] }
 0x369   :  { %1143 = vmatpush1.msra.mxu0 %v2829_v58  ;;  %2310 = vmatpush3.msra.mxu1 %v2932_v30 }
 0x36a   :  { %1144 = vmatprep.subr.mxu0 %v2832_v59  ;;  %2311 = vmatprep.subr.mxu1 %v3746_v42 }
 0x36b   :  { %1145 = vmatpush1.msra.mxu0 %v2836_v61  ;;  %2312 = vmatpush3.msra.mxu1 %v2938_v31 }
 0x36c   :  { %1146 = vmatprep.subr.mxu0 %v2842_v63  ;;  %2313 = vmatprep.subr.mxu1 %v3746_v42 }
 0x36d   :  { %1147 = vmatpush1.msra.mxu0 %v2845_v1  ;;  %2314 = vmatpush3.msra.mxu1 %v2944_v32  ;;  %v3768_v1 = vld [vmem:[#allocation27_spill] sm:$0xff] }
 0x36e   :  { %1148 = vmatprep.subr.mxu0 %v2848_v2  ;;  %2315 = vmatprep.subr.mxu1 %v3746_v42 }
 0x36f   :  { %1149 = vmatpush1.msra.mxu0 %v2852_v4  ;;  %2316 = vmatpush3.msra.mxu1 %v2948_v33 }
 0x370   :  { %1150 = vmatprep.subr.mxu0 %v2858_v6  ;;  %2317 = vmatprep.subr.mxu1 %v3746_v42 }
 0x371   :  { %1151 = vmatpush1.msra.mxu0 %v2861_v7  ;;  %2318 = vmatpush3.msra.mxu1 %v2954_v34 }
 0x372   :  { %1152 = vmatprep.subr.mxu0 %v2864_v8  ;;  %2319 = vmatprep.subr.mxu1 %v3746_v42 }
 0x373   :  { %1153 = vmatpush1.msra.mxu0 %v2868_v10  ;;  %2320 = vmatpush3.msra.mxu1 %v2960_v35 }
 0x374   :  { %1154 = vmatprep.subr.mxu0 %v2872_v12  ;;  %2321 = vmatprep.subr.mxu1 %v3746_v42 }
 0x375   :  { %1155 = vmatpush1.msra.mxu0 %v2875_v13  ;;  %2322 = vmatpush3.msra.mxu1 %v2966_v36 }
 0x376   :  { %1156 = vmatprep.subr.mxu0 %v2878_v14  ;;  %2323 = vmatprep.subr.mxu1 %v3746_v42 }
 0x377   :  { %1157 = vmatpush1.msra.mxu0 %v2881_v15  ;;  %2324 = vmatpush3.msra.mxu1 %v2972_v37  ;;  %v3769_v15 = vld [vmem:[#allocation36_spill] sm:$0xff] }
 0x378   :  { %1158 = vmatprep.subr.mxu0 %v2885_v17  ;;  %2325 = vmatprep.subr.mxu1 %v3746_v42 }
 0x379   :  { %1159 = vmatpush1.msra.mxu0 %v2888_v18  ;;  %2326 = vmatpush3.msra.mxu1 %v2978_v38 }
 0x37a   :  { %1160 = vmatprep.subr.mxu0 %v2892_v19  ;;  %2327 = vmatprep.subr.mxu1 %v3746_v42 }
 0x37b   :  { %1161 = vmatpush1.msra.mxu0 %v2896_v20  ;;  %2328 = vmatpush3.msra.mxu1 %v2984_v39 }
 0x37c   :  { %1162 = vmatprep.subr.mxu0 %v2902_v23  ;;  %2329 = vmatprep.subr.mxu1 %v3746_v42 }
 0x37d   :  { %1163 = vmatpush1.msra.mxu0 %v3747_v16  ;;  %2330 = vmatpush3.msra.mxu1 %v3763_v46 }
 0x37e   :  { %1164 = vmatprep.subr.mxu0 %v3764_v47  ;;  %2331 = vmatprep.subr.mxu1 %v3746_v42  ;;  %v3462_v47 = vld [vmem:[#allocation8] sm:$0xff] }
 0x37f   :  { %1165 = vmatpush1.msra.mxu0 %v3765_v49  ;;  %1198 = vmatprep.mubr.f32.mxu0 %v3746_v42  ;;  %3771 = vst [vmem:[#allocation22_spill] sm:$0xff] %v3462_v47  ;;  %v3772_v49 = vld [vmem:[#allocation28_spill] sm:$0xff] }
 0x380   :  { %2332 = vmatpush3.msra.mxu1 %v3766_v51  ;;  %2333 = vmatprep.mubr.msk.f32.mxu1 %vm2733_vm0, %v3746_v42 }
 0x381   :  { %1303 = vmatprep.subr.mxu0 %v3327_v52  ;;  %2336 = vmatprep.subr.mxu1 %v3746_v42 }
 0x420   :  { %v1031_v53 = vpop.f32.mrf.mxu0  ;;  %v1102_v55 = vpop.f32.mrf.mxu1 }
 0x421   :  { %v1106_v58 = vadd.f32 %v1031_v53, %v3767_v57  ;;  %v1120_v12 = vadd.f32 %v3103_v25, %v1102_v55 }
 0x422   :  { %v2300_v59 = vpop.f32.mrf.mxu1  ;;  %v1033_v63 = vpop.f32.mrf.mxu0 }
 0x423   :  { %v1929_v61 = vmul.f32 -1.442695, %v1106_v58  ;;  %v1107_v2 = vadd.f32 %v1033_v63, %v3768_v1  ;;  %v3773_v59 = vld [vmem:[#allocation29_spill] sm:$0xff] }
 0x425   :  { %2517 = vpow2.f32 %v1929_v61  ;;  %v1930_v4 = vmul.f32 -1.442695, %v1107_v2 }
 0x427   :  { %2519 = vpow2.f32 %v1930_v4 }
 0x432   :  { %v2518_v6 = vpop.eup %2517 }
 0x433   :  { %v1114_v7 = vadd.f32 1.0, %v2518_v6 }
 0x434   :  { %v2520_v8 = vpop.eup %2519 }
 0x435   :  { %2521 = vrcp.f32 %v1114_v7  ;;  %v1115_v10 = vadd.f32 1.0, %v2520_v8 }
 0x437   :  { %2523 = vrcp.f32 %v1115_v10  ;;  %v3774_v10 = vld [vmem:[#allocation39_spill] sm:$0xff] }
 0x442   :  { %v2522_v13 = vpop.eup %2521 }
 0x443   :  { %v1121_v14 = vmul.f32 %v2522_v13, %v1120_v12 }
 0x444   :  { %v2524_v18 = vpop.eup %2523 }
 0x445   :  { %v1122_v17 = vadd.f32 %v1121_v14, %v3769_v15  ;;  %v1124_v19 = vsub.f32 1.0, %v2524_v18  ;;  %v1126_v23 = vmul.f32 %v2524_v18, %v3258_v9  ;;  %v3454_v9 = vld [vmem:[#allocation8 + $0x18] sm:$0xff] }
 0x447   :  { %2525 = vtanh.f32 %v1122_v17 }
 0x454   :  { %v2526_v20 = vpop.eup %2525 }
 0x455   :  { %v1125_v21 = vmul.f32 %v2526_v20, %v1124_v19  ;;  %v3485_v20 = vld [vmem:[#allocation8 + $0x160] sm:$0xff] }
 0x457   :  { %v3336_v16 = vadd.f32 %v1126_v23, %v1125_v21  ;;  %v3491_v21 = vld [vmem:[#allocation8 + $0x148] sm:$0xff]  ;;  %v3497_v23 = vld [vmem:[#allocation8 + $0x130] sm:$0xff] }
 0x459   :  { %1199 = vmatmul.mubr.f32.vlgmr.msra.gmra.mxu0 %v3336_v16  ;;  %2334 = vmatmul.mubr.f32.vlgmr.msra.gmra.mxu1 %v3336_v16 }
 0x45a   :  { %1304 = vmatpush1.msra.mxu0 %v3340_v60  ;;  %2337 = vmatpush3.msra.mxu1 %v3343_v44 }
 0x45b   :  { %1305 = vmatprep.subr.mxu0 %v3346_v54  ;;  %2338 = vmatprep.subr.mxu1 %v3746_v42 }
 0x45c   :  { %1306 = vmatpush1.msra.mxu0 %v3350_v0  ;;  %2339 = vmatpush3.msra.mxu1 %v2915_v27  ;;  %v3370_v27 = vld [vmem:[#allocation8 + $0x110] sm:$0xff] }
 0x45d   :  { %1307 = vmatprep.subr.mxu0 %v3354_v26  ;;  %2340 = vmatprep.subr.mxu1 %v3746_v42 }
 0x45e   :  { %1308 = vmatpush1.msra.mxu0 %v3358_v24  ;;  %2341 = vmatpush3.msra.mxu1 %v2921_v28  ;;  %v3378_v28 = vld [vmem:[#allocation8 + $0xf8] sm:$0xff] }
 0x45f   :  { %1309 = vmatprep.subr.mxu0 %v3362_v40  ;;  %2342 = vmatprep.subr.mxu1 %v3746_v42 }
 0x460   :  { %1310 = vmatpush1.msra.mxu0 %v3366_v50  ;;  %2343 = vmatpush3.msra.mxu1 %v2927_v29  ;;  %v3386_v29 = vld [vmem:[#allocation8 + $0xe0] sm:$0xff] }
 0x461   :  { %1311 = vmatprep.subr.mxu0 %v3370_v27  ;;  %2344 = vmatprep.subr.mxu1 %v3746_v42 }
 0x462   :  { %1312 = vmatpush1.msra.mxu0 %v3374_v43  ;;  %2345 = vmatpush3.msra.mxu1 %v2932_v30  ;;  %v3394_v30 = vld [vmem:[#allocation8 + $0xc8] sm:$0xff] }
 0x463   :  { %1313 = vmatprep.subr.mxu0 %v3378_v28  ;;  %2346 = vmatprep.subr.mxu1 %v3746_v42 }
 0x464   :  { %1314 = vmatpush1.msra.mxu0 %v3382_v22  ;;  %2347 = vmatpush3.msra.mxu1 %v2938_v31  ;;  %v3402_v31 = vld [vmem:[#allocation8 + $0xb0] sm:$0xff] }
 0x465   :  { %1315 = vmatprep.subr.mxu0 %v3386_v29  ;;  %2348 = vmatprep.subr.mxu1 %v3746_v42 }
 0x466   :  { %1316 = vmatpush1.msra.mxu0 %v3390_v11  ;;  %2349 = vmatpush3.msra.mxu1 %v2944_v32  ;;  %v3410_v32 = vld [vmem:[#allocation8 + $0x98] sm:$0xff] }
 0x467   :  { %1317 = vmatprep.subr.mxu0 %v3394_v30  ;;  %2350 = vmatprep.subr.mxu1 %v3746_v42 }
 0x468   :  { %1318 = vmatpush1.msra.mxu0 %v3398_v5  ;;  %2351 = vmatpush3.msra.mxu1 %v2948_v33  ;;  %v3418_v33 = vld [vmem:[#allocation8 + $0x80] sm:$0xff] }
 0x469   :  { %1319 = vmatprep.subr.mxu0 %v3402_v31  ;;  %2352 = vmatprep.subr.mxu1 %v3746_v42 }
 0x46a   :  { %1320 = vmatpush1.msra.mxu0 %v3406_v62  ;;  %2353 = vmatpush3.msra.mxu1 %v2954_v34  ;;  %v3426_v34 = vld [vmem:[#allocation8 + $0x68] sm:$0xff] }
 0x46b   :  { %1321 = vmatprep.subr.mxu0 %v3410_v32  ;;  %2354 = vmatprep.subr.mxu1 %v3746_v42 }
 0x46c   :  { %1322 = vmatpush1.msra.mxu0 %v3414_v3  ;;  %2355 = vmatpush3.msra.mxu1 %v2960_v35  ;;  %v3434_v35 = vld [vmem:[#allocation8 + $0x50] sm:$0xff] }
 0x46d   :  { %1323 = vmatprep.subr.mxu0 %v3418_v33  ;;  %2356 = vmatprep.subr.mxu1 %v3746_v42 }
 0x46e   :  { %1324 = vmatpush1.msra.mxu0 %v3422_v45  ;;  %2357 = vmatpush3.msra.mxu1 %v2966_v36  ;;  %v3442_v36 = vld [vmem:[#allocation8 + $0x38] sm:$0xff] }
 0x46f   :  { %1325 = vmatprep.subr.mxu0 %v3426_v34  ;;  %2358 = vmatprep.subr.mxu1 %v3746_v42 }
 0x470   :  { %1326 = vmatpush1.msra.mxu0 %v3430_v41  ;;  %2359 = vmatpush3.msra.mxu1 %v2972_v37  ;;  %v3450_v37 = vld [vmem:[#allocation8 + $0x20] sm:$0xff] }
 0x471   :  { %1327 = vmatprep.subr.mxu0 %v3434_v35  ;;  %2360 = vmatprep.subr.mxu1 %v3746_v42 }
 0x472   :  { %1328 = vmatpush1.msra.mxu0 %v3438_v48  ;;  %2361 = vmatpush3.msra.mxu1 %v2978_v38  ;;  %v3458_v38 = vld [vmem:[#allocation8 + $0x8] sm:$0xff] }
 0x473   :  { %1329 = vmatprep.subr.mxu0 %v3442_v36  ;;  %2362 = vmatprep.subr.mxu1 %v3746_v42  ;;  %3770 = vst [vmem:[#allocation17_spill] sm:$0xff] %v3458_v38 }
 0x474   :  { %1330 = vmatpush1.msra.mxu0 %v3446_v56  ;;  %2363 = vmatpush3.msra.mxu1 %v2984_v39 }
 0x475   :  { %1331 = vmatprep.subr.mxu0 %v3450_v37  ;;  %2364 = vmatprep.subr.mxu1 %v3746_v42 }
 0x476   :  { %1332 = vmatpush1.msra.mxu0 %v3454_v9  ;;  %2365 = vmatpush3.msra.mxu1 %v3763_v46 }
 0x477   :  { %1333 = vmatprep.subr.mxu0 %v3458_v38  ;;  %2366 = vmatprep.subr.mxu1 %v3746_v42 }
 0x478   :  { %1334 = vmatpush1.msra.mxu0 %v3462_v47  ;;  %1367 = vmatprep.mubr.f32.mxu0 %v3746_v42 }
 0x479   :  { %2367 = vmatpush3.msra.mxu1 %v3766_v51  ;;  %2368 = vmatprep.mubr.msk.f32.mxu1 %vm2733_vm0, %v3746_v42 }
 0x47a   :  { %1472 = vmatprep.subr.mxu0 %v3327_v52  ;;  %2371 = vmatprep.subr.mxu1 %v3746_v42 }
 0x519   :  { %v1200_v39 = vpop.f32.mrf.mxu0  ;;  %v1271_v46 = vpop.f32.mrf.mxu1 }
 0x51a   :  { %v1275_v53 = vadd.f32 %v1200_v39, %v3772_v49  ;;  %v1289_v6 = vadd.f32 %v3103_v25, %v1271_v46  ;;  %v3509_v39 = vld [vmem:[#allocation8 + $0x100] sm:$0xff]  ;;  %v3515_v46 = vld [vmem:[#allocation8 + $0xe8] sm:$0xff]  ;;  %v3521_v49 = vld [vmem:[#allocation8 + $0xd0] sm:$0xff] }
 0x51b   :  { %v2335_v55 = vpop.f32.mrf.mxu1  ;;  %v1202_v58 = vpop.f32.mrf.mxu0 }
 0x51c   :  { %v1931_v57 = vmul.f32 -1.442695, %v1275_v53  ;;  %v1276_v61 = vadd.f32 %v1202_v58, %v3773_v59  ;;  %v3527_v53 = vld [vmem:[#allocation8 + $0xb8] sm:$0xff]  ;;  %v3533_v55 = vld [vmem:[#allocation8 + $0xa0] sm:$0xff]  ;;  %v3545_v58 = vld [vmem:[#allocation8 + $0x70] sm:$0xff] }
 0x51d   :  { %v3551_v59 = vld [vmem:[#allocation8 + $0x58] sm:$0xff] }
 0x51e   :  { %2527 = vpow2.f32 %v1931_v57  ;;  %v1932_v63 = vmul.f32 -1.442695, %v1276_v61  ;;  %v3539_v57 = vld [vmem:[#allocation8 + $0x88] sm:$0xff]  ;;  %v3557_v61 = vld [vmem:[#allocation8 + $0x40] sm:$0xff] }
 0x520   :  { %2529 = vpow2.f32 %v1932_v63  ;;  %v3563_v63 = vld [vmem:[#allocation8 + $0x28] sm:$0xff] }
 0x521   :  { %3775 = vst [vmem:[#allocation23_spill] sm:$0xff] %v3563_v63 }
 0x52b   :  { %v2528_v51 = vpop.eup %2527 }
 0x52c   :  { %v1283_v1 = vadd.f32 1.0, %v2528_v51  ;;  %v3570_v51 = vld [vmem:[#allocation8 + $0x10] sm:$0xff] }
 0x52d   :  { %v2530_v2 = vpop.eup %2529  ;;  %3776 = vst [vmem:[#allocation16_spill] sm:$0xff] %v3570_v51 }
 0x52e   :  { %2531 = vrcp.f32 %v1283_v1  ;;  %v1284_v4 = vadd.f32 1.0, %v2530_v2 }
 0x530   :  { %2533 = vrcp.f32 %v1284_v4  ;;  %v3777_v4 = vld [vmem:[#allocation30_spill] sm:$0xff] }
 0x53b   :  { %v2532_v7 = vpop.eup %2531 }
 0x53c   :  { %v1290_v8 = vmul.f32 %v2532_v7, %v1289_v6 }
 0x53d   :  { %v2534_v13 = vpop.eup %2533 }
 0x53e   :  { %v1291_v12 = vadd.f32 %v1290_v8, %v3774_v10  ;;  %v1293_v14 = vsub.f32 1.0, %v2534_v13  ;;  %v1295_v18 = vmul.f32 %v2534_v13, %v3336_v16  ;;  %v3503_v16 = vld [vmem:[#allocation8 + $0x118] sm:$0xff] }
 0x540   :  { %2535 = vtanh.f32 %v1291_v12  ;;  %v3778_v12 = vld [vmem:[#allocation31_spill] sm:$0xff] }
 0x54d   :  { %v2536_v15 = vpop.eup %2535 }
 0x54e   :  { %v1294_v17 = vmul.f32 %v2536_v15, %v1293_v14 }
 0x550   :  { %v3476_v19 = vadd.f32 %v1295_v18, %v1294_v17 }
 0x552   :  { %1368 = vmatmul.mubr.f32.vlgmr.msra.gmra.mxu0 %v3476_v19  ;;  %2369 = vmatmul.mubr.f32.vlgmr.msra.gmra.mxu1 %v3476_v19 }
 0x553   :  { %1473 = vmatpush1.msra.mxu0 %v3340_v60  ;;  %2372 = vmatpush3.msra.mxu1 %v3343_v44 }
 0x554   :  { %1474 = vmatprep.subr.mxu0 %v3346_v54  ;;  %2373 = vmatprep.subr.mxu1 %v3746_v42 }
 0x555   :  { %1475 = vmatpush1.msra.mxu0 %v3350_v0  ;;  %2374 = vmatpush3.msra.mxu1 %v3485_v20 }
 0x556   :  { %1476 = vmatprep.subr.mxu0 %v3354_v26  ;;  %2375 = vmatprep.subr.mxu1 %v3746_v42 }
 0x557   :  { %1477 = vmatpush1.msra.mxu0 %v3358_v24  ;;  %2376 = vmatpush3.msra.mxu1 %v3491_v21 }
 0x558   :  { %1478 = vmatprep.subr.mxu0 %v3362_v40  ;;  %2377 = vmatprep.subr.mxu1 %v3746_v42 }
 0x559   :  { %1479 = vmatpush1.msra.mxu0 %v3366_v50  ;;  %2378 = vmatpush3.msra.mxu1 %v3497_v23 }
 0x55a   :  { %1480 = vmatprep.subr.mxu0 %v3370_v27  ;;  %2379 = vmatprep.subr.mxu1 %v3746_v42 }
 0x55b   :  { %1481 = vmatpush1.msra.mxu0 %v3374_v43  ;;  %2380 = vmatpush3.msra.mxu1 %v3503_v16 }
 0x55c   :  { %1482 = vmatprep.subr.mxu0 %v3378_v28  ;;  %2381 = vmatprep.subr.mxu1 %v3746_v42 }
 0x55d   :  { %1483 = vmatpush1.msra.mxu0 %v3382_v22  ;;  %2382 = vmatpush3.msra.mxu1 %v3509_v39 }
 0x55e   :  { %1484 = vmatprep.subr.mxu0 %v3386_v29  ;;  %2383 = vmatprep.subr.mxu1 %v3746_v42 }
 0x55f   :  { %1485 = vmatpush1.msra.mxu0 %v3390_v11  ;;  %2384 = vmatpush3.msra.mxu1 %v3515_v46 }
 0x560   :  { %1486 = vmatprep.subr.mxu0 %v3394_v30  ;;  %2385 = vmatprep.subr.mxu1 %v3746_v42 }
 0x561   :  { %1487 = vmatpush1.msra.mxu0 %v3398_v5  ;;  %2386 = vmatpush3.msra.mxu1 %v3521_v49 }
 0x562   :  { %1488 = vmatprep.subr.mxu0 %v3402_v31  ;;  %2387 = vmatprep.subr.mxu1 %v3746_v42 }
 0x563   :  { %1489 = vmatpush1.msra.mxu0 %v3406_v62  ;;  %2388 = vmatpush3.msra.mxu1 %v3527_v53 }
 0x564   :  { %1490 = vmatprep.subr.mxu0 %v3410_v32  ;;  %2389 = vmatprep.subr.mxu1 %v3746_v42 }
 0x565   :  { %1491 = vmatpush1.msra.mxu0 %v3414_v3  ;;  %2390 = vmatpush3.msra.mxu1 %v3533_v55 }
 0x566   :  { %1492 = vmatprep.subr.mxu0 %v3418_v33  ;;  %2391 = vmatprep.subr.mxu1 %v3746_v42 }
 0x567   :  { %1493 = vmatpush1.msra.mxu0 %v3422_v45  ;;  %2392 = vmatpush3.msra.mxu1 %v3539_v57 }
 0x568   :  { %1494 = vmatprep.subr.mxu0 %v3426_v34  ;;  %2393 = vmatprep.subr.mxu1 %v3746_v42 }
 0x569   :  { %1495 = vmatpush1.msra.mxu0 %v3430_v41  ;;  %2394 = vmatpush3.msra.mxu1 %v3545_v58 }
 0x56a   :  { %1496 = vmatprep.subr.mxu0 %v3434_v35  ;;  %2395 = vmatprep.subr.mxu1 %v3746_v42 }
 0x56b   :  { %1497 = vmatpush1.msra.mxu0 %v3438_v48  ;;  %2396 = vmatpush3.msra.mxu1 %v3551_v59 }
 0x56c   :  { %1498 = vmatprep.subr.mxu0 %v3442_v36  ;;  %2397 = vmatprep.subr.mxu1 %v3746_v42 }
 0x56d   :  { %1499 = vmatpush1.msra.mxu0 %v3446_v56  ;;  %2398 = vmatpush3.msra.mxu1 %v3557_v61 }
 0x56e   :  { %1500 = vmatprep.subr.mxu0 %v3450_v37  ;;  %2399 = vmatprep.subr.mxu1 %v3746_v42 }
 0x56f   :  { %1501 = vmatpush1.msra.mxu0 %v3454_v9  ;;  %2400 = vmatpush3.msra.mxu1 %v3563_v63  ;;  %v3779_v63 = vld [vmem:[#allocation38_spill] sm:$0xff] }
 0x570   :  { %1502 = vmatprep.subr.mxu0 %v3458_v38  ;;  %2401 = vmatprep.subr.mxu1 %v3746_v42 }
 0x571   :  { %1503 = vmatpush1.msra.mxu0 %v3462_v47  ;;  %1536 = vmatprep.mubr.f32.mxu0 %v3746_v42 }
 0x572   :  { %2402 = vmatpush3.msra.mxu1 %v3570_v51  ;;  %2403 = vmatprep.mubr.msk.f32.mxu1 %vm2733_vm0, %v3746_v42 }
 0x573   :  { %1641 = vmatprep.subr.mxu0 %v3327_v52  ;;  %2406 = vmatprep.subr.mxu1 %v3746_v42 }
 0x612   :  { %v1369_v1 = vpop.f32.mrf.mxu0  ;;  %v1440_v2 = vpop.f32.mrf.mxu1 }
 0x613   :  { %v1444_v6 = vadd.f32 %v1369_v1, %v3777_v4  ;;  %v1458_v52 = vadd.f32 %v3103_v25, %v1440_v2  ;;  %v3780_v25 = vld [vmem:[#allocation23_spill] sm:$0xff] }
 0x614   :  { %v2370_v7 = vpop.f32.mrf.mxu1  ;;  %v1371_v10 = vpop.f32.mrf.mxu0 }
 0x615   :  { %v1933_v8 = vmul.f32 -1.442695, %v1444_v6  ;;  %v1445_v13 = vadd.f32 %v1371_v10, %v3778_v12 }
 0x617   :  { %2537 = vpow2.f32 %v1933_v8  ;;  %v1934_v14 = vmul.f32 -1.442695, %v1445_v13 }
 0x619   :  { %2539 = vpow2.f32 %v1934_v14 }
 0x624   :  { %v2538_v15 = vpop.eup %2537 }
 0x625   :  { %v1452_v17 = vadd.f32 1.0, %v2538_v15 }
 0x626   :  { %v2540_v18 = vpop.eup %2539 }
 0x627   :  { %2541 = vrcp.f32 %v1452_v17  ;;  %v1453_v51 = vadd.f32 1.0, %v2540_v18  ;;  %v3788_v17 = vld [vmem:[#allocation35_spill] sm:$0xff] }
 0x629   :  { %2543 = vrcp.f32 %v1453_v51  ;;  %v3787_v51 = vld [vmem:[#allocation34_spill] sm:$0xff] }
 0x634   :  { %v2542_v47 = vpop.eup %2541 }
 0x635   :  { %v1459_v38 = vmul.f32 %v2542_v47, %v1458_v52  ;;  %v1817_v47 = vld [vmem:[#allocation9 + $0x68] sm:$0xff] }
 0x636   :  { %v2544_v4 = vpop.eup %2543 }
 0x637   :  { %v1460_v1 = vadd.f32 %v1459_v38, %v3779_v63  ;;  %v1462_v6 = vsub.f32 1.0, %v2544_v4  ;;  %v1464_v10 = vmul.f32 %v2544_v4, %v3476_v19  ;;  %v1818_v38 = vld [vmem:[#allocation9 + $0x70] sm:$0xff]  ;;  %v1816_v19 = vld [vmem:[#allocation9 + $0x60] sm:$0xff] }
 0x639   :  { %2545 = vtanh.f32 %v1460_v1 }
 0x646   :  { %v2546_v7 = vpop.eup %2545 }
 0x647   :  { %v1463_v8 = vmul.f32 %v2546_v7, %v1462_v6 }
 0x649   :  { %v3582_v12 = vadd.f32 %v1464_v10, %v1463_v8 }
 0x64b   :  { %1537 = vmatmul.mubr.f32.vlgmr.msra.gmra.mxu0 %v3582_v12  ;;  %2404 = vmatmul.mubr.f32.vlgmr.msra.gmra.mxu1 %v3582_v12 }
 0x64c   :  { %1642 = vmatpush1.msra.mxu0 %v3340_v60  ;;  %2407 = vmatpush3.msra.mxu1 %v3343_v44  ;;  %v3781_v60 = vld [vmem:[#allocation17_spill] sm:$0xff]  ;;  %v3782_v44 = vld [vmem:[#allocation22_spill] sm:$0xff] }
 0x64d   :  { %1643 = vmatprep.subr.mxu0 %v3346_v54  ;;  %2408 = vmatprep.subr.mxu1 %v3746_v42  ;;  %v3783_v54 = vld [vmem:[#allocation16_spill] sm:$0xff] }
 0x64e   :  { %1644 = vmatpush1.msra.mxu0 %v3350_v0  ;;  %2409 = vmatpush3.msra.mxu1 %v3485_v20  ;;  %v1815_v20 = vld [vmem:[#allocation9 + $0x58] sm:$0xff] }
 0x64f   :  { %1645 = vmatprep.subr.mxu0 %v3354_v26  ;;  %2410 = vmatprep.subr.mxu1 %v3746_v42 }
 0x650   :  { %1646 = vmatpush1.msra.mxu0 %v3358_v24  ;;  %2411 = vmatpush3.msra.mxu1 %v3491_v21  ;;  %v3784_v24 = vld [vmem:[#allocation32_spill] sm:$0xff]  ;;  %v1814_v21 = vld [vmem:[#allocation9 + $0x50] sm:$0xff] }
 0x651   :  { %1647 = vmatprep.subr.mxu0 %v3362_v40  ;;  %2412 = vmatprep.subr.mxu1 %v3746_v42 }
 0x652   :  { %1648 = vmatpush1.msra.mxu0 %v3366_v50  ;;  %2413 = vmatpush3.msra.mxu1 %v3497_v23  ;;  %v1813_v23 = vld [vmem:[#allocation9 + $0x48] sm:$0xff] }
 0x653   :  { %1649 = vmatprep.subr.mxu0 %v3370_v27  ;;  %2414 = vmatprep.subr.mxu1 %v3746_v42 }
 0x654   :  { %1650 = vmatpush1.msra.mxu0 %v3374_v43  ;;  %2415 = vmatpush3.msra.mxu1 %v3503_v16  ;;  %v1812_v16 = vld [vmem:[#allocation9 + $0x40] sm:$0xff] }
 0x655   :  { %1651 = vmatprep.subr.mxu0 %v3378_v28  ;;  %2416 = vmatprep.subr.mxu1 %v3746_v42  ;;  %v3785_v28 = vld [vmem:[#allocation33_spill] sm:$0xff] }
 0x656   :  { %1652 = vmatpush1.msra.mxu0 %v3382_v22  ;;  %2417 = vmatpush3.msra.mxu1 %v3509_v39  ;;  %v1811_v39 = vld [vmem:[#allocation9 + $0x38] sm:$0xff] }
 0x657   :  { %1653 = vmatprep.subr.mxu0 %v3386_v29  ;;  %2418 = vmatprep.subr.mxu1 %v3746_v42 }
 0x658   :  { %1654 = vmatpush1.msra.mxu0 %v3390_v11  ;;  %2419 = vmatpush3.msra.mxu1 %v3515_v46  ;;  %v1810_v46 = vld [vmem:[#allocation9 + $0x30] sm:$0xff] }
 0x659   :  { %1655 = vmatprep.subr.mxu0 %v3394_v30  ;;  %2420 = vmatprep.subr.mxu1 %v3746_v42 }
 0x65a   :  { %1656 = vmatpush1.msra.mxu0 %v3398_v5  ;;  %2421 = vmatpush3.msra.mxu1 %v3521_v49  ;;  %v1809_v49 = vld [vmem:[#allocation9 + $0x28] sm:$0xff] }
 0x65b   :  { %1657 = vmatprep.subr.mxu0 %v3402_v31  ;;  %2422 = vmatprep.subr.mxu1 %v3746_v42 }
 0x65c   :  { %1658 = vmatpush1.msra.mxu0 %v3406_v62  ;;  %2423 = vmatpush3.msra.mxu1 %v3527_v53  ;;  %v3657_v62 = vld [vmem:[%s3698_s4] ss:$0 sm:$0xff] }
 0x65d   :  { %1659 = vmatprep.subr.mxu0 %v3410_v32  ;;  %2424 = vmatprep.subr.mxu1 %v3746_v42  ;;  %v1808_v53 = vld [vmem:[#allocation9 + $0x20] sm:$0xff] }
 0x65e   :  { %1660 = vmatpush1.msra.mxu0 %v3414_v3  ;;  %2425 = vmatpush3.msra.mxu1 %v3533_v55  ;;  %v1807_v55 = vld [vmem:[#allocation9 + $0x18] sm:$0xff] }
 0x65f   :  { %1661 = vmatprep.subr.mxu0 %v3418_v33  ;;  %2426 = vmatprep.subr.mxu1 %v3746_v42 }
 0x660   :  { %1662 = vmatpush1.msra.mxu0 %v3422_v45  ;;  %2427 = vmatpush3.msra.mxu1 %v3539_v57  ;;  %v3786_v45 = vld [vmem:[#allocation41_spill] sm:$0xff] }
 0x661   :  { %1663 = vmatprep.subr.mxu0 %v3426_v34  ;;  %2428 = vmatprep.subr.mxu1 %v3746_v42  ;;  %v1806_v57 = vld [vmem:[#allocation9 + $0x10] sm:$0xff] }
 0x662   :  { %1664 = vmatpush1.msra.mxu0 %v3430_v41  ;;  %2429 = vmatpush3.msra.mxu1 %v3545_v58  ;;  %v1805_v58 = vld [vmem:[#allocation9 + $0x8] sm:$0xff] }
 0x663   :  { %1665 = vmatprep.subr.mxu0 %v3434_v35  ;;  %2430 = vmatprep.subr.mxu1 %v3746_v42 }
 0x664   :  { %1666 = vmatpush1.msra.mxu0 %v3438_v48  ;;  %2431 = vmatpush3.msra.mxu1 %v3551_v59  ;;  %v1804_v59 = vld [vmem:[#allocation9] sm:$0xff] }
 0x665   :  { %1667 = vmatprep.subr.mxu0 %v3442_v36  ;;  %2432 = vmatprep.subr.mxu1 %v3746_v42 }
 0x666   :  { %1668 = vmatpush1.msra.mxu0 %v3446_v56  ;;  %2433 = vmatpush3.msra.mxu1 %v3557_v61 }
 0x667   :  { %1669 = vmatprep.subr.mxu0 %v3450_v37  ;;  %2434 = vmatprep.subr.mxu1 %v3746_v42 }
 0x668   :  { %1670 = vmatpush1.msra.mxu0 %v3454_v9  ;;  %2435 = vmatpush3.msra.mxu1 %v3780_v25  ;;  %v1819_v9 = vld [vmem:[#allocation9 + $0x78] sm:$0xff] }
 0x669   :  { %1671 = vmatprep.subr.mxu0 %v3781_v60  ;;  %2436 = vmatprep.subr.mxu1 %v3746_v42 }
 0x66a   :  { %1672 = vmatpush1.msra.mxu0 %v3782_v44  ;;  %1705 = vmatprep.mubr.f32.mxu0 %v3746_v42 }
 0x66b   :  { %2437 = vmatpush3.msra.mxu1 %v3783_v54  ;;  %2438 = vmatprep.mubr.msk.f32.mxu1 %vm2733_vm0, %v3746_v42 }
 0x66c   :  { %2441 = vmatprep.subr.mxu0 %v3746_v42 }
 0x70b   :  { %v1538_v0 = vpop.f32.mrf.mxu0  ;;  %v1609_v26 = vpop.f32.mrf.mxu1 }
 0x70c   :  { %v1613_v40 = vadd.f32 %v1538_v0, %v3784_v24  ;;  %v1627_v32 = vadd.f32 %v3657_v62, %v1609_v26 }
 0x70d   :  { %v2405_v50 = vpop.f32.mrf.mxu1  ;;  %v1540_v43 = vpop.f32.mrf.mxu0 }
 0x70e   :  { %v1935_v27 = vmul.f32 -1.442695, %v1613_v40  ;;  %v1614_v22 = vadd.f32 %v1540_v43, %v3785_v28  ;;  %v1939_v40 = vld [vmem:[%s3700_s6] ss:$0 sm:$0xff] }
 0x710   :  { %2547 = vpow2.f32 %v1935_v27  ;;  %v1936_v29 = vmul.f32 -1.442695, %v1614_v22 }
 0x712   :  { %2549 = vpow2.f32 %v1936_v29 }
 0x71d   :  { %v2548_v11 = vpop.eup %2547 }
 0x71e   :  { %v1621_v30 = vadd.f32 1.0, %v2548_v11 }
 0x71f   :  { %v2550_v5 = vpop.eup %2549 }
 0x720   :  { %2551 = vrcp.f32 %v1621_v30  ;;  %v1622_v31 = vadd.f32 1.0, %v2550_v5 }
 0x722   :  { %2553 = vrcp.f32 %v1622_v31 }
 0x72d   :  { %v2552_v3 = vpop.eup %2551 }
 0x72e   :  { %v1628_v33 = vmul.f32 %v2552_v3, %v1627_v32 }
 0x72f   :  { %v2554_v41 = vpop.eup %2553 }
 0x730   :  { %v1629_v34 = vadd.f32 %v1628_v33, %v3786_v45  ;;  %v1631_v35 = vsub.f32 1.0, %v2554_v41  ;;  %v1633_v56 = vmul.f32 %v2554_v41, %v3582_v12  ;;  %v3789_v12 = vld [vmem:[#allocation40_spill] sm:$0xff] }
 0x732   :  { %2555 = vtanh.f32 %v1629_v34 }
 0x73f   :  { %v2556_v48 = vpop.eup %2555 }
 0x740   :  { %v1632_v36 = vmul.f32 %v2556_v48, %v1631_v35 }
 0x742   :  { %v3662_v37 = vadd.f32 %v1633_v56, %v1632_v36 }
 0x744   :  { %1706 = vmatmul.mubr.f32.vlgmr.msra.gmra.mxu0 %v3662_v37  ;;  %2439 = vmatmul.mubr.f32.vlgmr.msra.gmra.mxu1 %v3662_v37 }
 0x745   :  { %2473 = vmatprep.mubr.msk.f32.mxu0 %vm2733_vm0, %v3746_v42  ;;  %2442 = vmatpush3.msra.mxu0 %v1819_v9 }
 0x746   :  { %2443 = vmatprep.subr.mxu0 %v3746_v42 }
 0x747   :  { %2444 = vmatpush3.msra.mxu0 %v1818_v38 }
 0x748   :  { %2445 = vmatprep.subr.mxu0 %v3746_v42 }
 0x749   :  { %2446 = vmatpush3.msra.mxu0 %v1817_v47 }
 0x74a   :  { %2447 = vmatprep.subr.mxu0 %v3746_v42 }
 0x74b   :  { %2448 = vmatpush3.msra.mxu0 %v1816_v19 }
 0x74c   :  { %2449 = vmatprep.subr.mxu0 %v3746_v42 }
 0x74d   :  { %2450 = vmatpush3.msra.mxu0 %v1815_v20 }
 0x74e   :  { %2451 = vmatprep.subr.mxu0 %v3746_v42 }
 0x74f   :  { %2452 = vmatpush3.msra.mxu0 %v1814_v21 }
 0x750   :  { %2453 = vmatprep.subr.mxu0 %v3746_v42 }
 0x751   :  { %2454 = vmatpush3.msra.mxu0 %v1813_v23 }
 0x752   :  { %2455 = vmatprep.subr.mxu0 %v3746_v42 }
 0x753   :  { %2456 = vmatpush3.msra.mxu0 %v1812_v16 }
 0x754   :  { %2457 = vmatprep.subr.mxu0 %v3746_v42 }
 0x755   :  { %2458 = vmatpush3.msra.mxu0 %v1811_v39 }
 0x756   :  { %2459 = vmatprep.subr.mxu0 %v3746_v42 }
 0x757   :  { %2460 = vmatpush3.msra.mxu0 %v1810_v46 }
 0x758   :  { %2461 = vmatprep.subr.mxu0 %v3746_v42 }
 0x759   :  { %2462 = vmatpush3.msra.mxu0 %v1809_v49 }
 0x75a   :  { %2463 = vmatprep.subr.mxu0 %v3746_v42 }
 0x75b   :  { %2464 = vmatpush3.msra.mxu0 %v1808_v53 }
 0x75c   :  { %2465 = vmatprep.subr.mxu0 %v3746_v42 }
 0x75d   :  { %2466 = vmatpush3.msra.mxu0 %v1807_v55 }
 0x75e   :  { %2467 = vmatprep.subr.mxu0 %v3746_v42 }
 0x75f   :  { %2468 = vmatpush3.msra.mxu0 %v1806_v57 }
 0x760   :  { %2469 = vmatprep.subr.mxu0 %v3746_v42 }
 0x761   :  { %2470 = vmatpush3.msra.mxu0 %v1805_v58 }
 0x762   :  { %2471 = vmatprep.subr.mxu0 %v3746_v42 }
 0x763   :  { %2472 = vmatpush3.msra.mxu0 %v1804_v59 }
 0x804   :  { %v1707_v61 = vpop.f32.mrf.mxu0  ;;  %v1778_v63 = vpop.f32.mrf.mxu1 }
 0x805   :  { %v1782_v2 = vadd.f32 %v1707_v61, %v3787_v51  ;;  %v1796_v42 = vadd.f32 %v3657_v62, %v1778_v63 }
 0x806   :  { %v2440_v13 = vpop.f32.mrf.mxu1  ;;  %v1709_v15 = vpop.f32.mrf.mxu0 }
 0x807   :  { %v1937_v14 = vmul.f32 -1.442695, %v1782_v2  ;;  %v1783_v18 = vadd.f32 %v1709_v15, %v3788_v17 }
 0x809   :  { %2557 = vpow2.f32 %v1937_v14  ;;  %v1938_v52 = vmul.f32 -1.442695, %v1783_v18 }
 0x80b   :  { %2559 = vpow2.f32 %v1938_v52 }
 0x816   :  { %v2558_v1 = vpop.eup %2557 }
 0x817   :  { %v1790_v4 = vadd.f32 1.0, %v2558_v1 }
 0x818   :  { %v2560_v6 = vpop.eup %2559 }
 0x819   :  { %2561 = vrcp.f32 %v1790_v4  ;;  %v1791_v7 = vadd.f32 1.0, %v2560_v6 }
 0x81b   :  { %2563 = vrcp.f32 %v1791_v7 }
 0x826   :  { %v2562_v8 = vpop.eup %2561 }
 0x827   :  { %v1797_v10 = vmul.f32 %v2562_v8, %v1796_v42 }
 0x828   :  { %v2564_v60 = vpop.eup %2563 }
 0x829   :  { %v1798_v25 = vadd.f32 %v1797_v10, %v3789_v12  ;;  %v1800_v44 = vsub.f32 1.0, %v2564_v60  ;;  %v1802_v26 = vmul.f32 %v2564_v60, %v3662_v37 }
 0x82b   :  { %2565 = vtanh.f32 %v1798_v25 }
 0x838   :  { %v2566_v54 = vpop.eup %2565 }
 0x839   :  { %v1801_v0 = vmul.f32 %v2566_v54, %v1800_v44 }
 0x83b   :  { %v1803_v24 = vadd.f32 %v1802_v26, %v1801_v0 }
 0x83d   :  { %2474 = vmatmul.mubr.f32.vlgmr.msra.gmra.mxu0 %v1803_v24 }
 0x8fd   :  { %v1893_v50 = vpop.f32.mrf.mxu0 }
 0x8fe   :  { %v1894_v27 = vadd.f32 %v1939_v40, %v1893_v50 }
 0x8ff   :  { %v2475_v43 = vpop.f32.mrf.mxu0 }
 0x900   :  { %1897 = vst [vmem:[#allocation11] sm:$0xff] %v1894_v27 }
 0x901   :  { %2707 = shalt.err (!%p2704_p10)
}
 0x902   :  { %1907 = dma.vmem_to_hbm [thread:$0]  %s1905_s28, 128, %s3701_s7, [#allocation5]  }
 0x903   :  { %2722 = dma.done.wait [#allocation5], 128  }
 0x904   :  { %2723 = vsyncadd [#allocation5], 4294967168 }
 0x905   :  { %1911 = vsyncpa [#allocation4], 1 }
 0x906   :  { %1912 = vsyncpa [#allocation7], 1 }
 0x907   :  { %1913 = vsyncpa [#allocation10], 1 }
 0x908   :  { %1914 = vsyncpa [#allocation5], 1 }

</bundles_post_ra>
